<compile_context>
chip_gen: v7x
topology: tpu7x:2x2x1
jax: 0.10.0
libtpu: 0.0.40
codegen_flags: <defaults>
</compile_context>

<pallas_src>
import numpy as np
import jax
import jax.numpy as jnp
from jax.experimental import pallas as pl
from jax.experimental.pallas import tpu as pltpu


# ---------------------------------------------------------------------------
# Host-side (numpy) constants baked in at trace time.
# ---------------------------------------------------------------------------
def _bilinear_matrix(out_size, in_size):
    """Row-stochastic (out, in) matrix matching F.interpolate(bilinear, align_corners=True)."""
    if in_size == 1:
        return np.ones((out_size, 1), np.float32)
    i = np.arange(out_size, dtype=np.float32)
    src = i * (in_size - 1) / max(out_size - 1, 1)
    i0 = np.clip(np.floor(src).astype(np.int64), 0, in_size - 2)
    frac = (src - i0).astype(np.float32)
    a = np.zeros((out_size, in_size), np.float32)
    rows = np.arange(out_size)
    a[rows, i0] += 1.0 - frac
    a[rows, i0 + 1] += frac
    return a


def _conv_masks(H, W, step):
    """(9, H*W) 0/1 masks: tap t=3*kh+kw is valid where the pixel it reads,
    (h + step*(kh-1), w + step*(kw-1)), lies inside the image (zero padding)."""
    hh, ww = np.meshgrid(np.arange(H), np.arange(W), indexing="ij")
    masks = np.zeros((9, H * W), np.float32)
    for kh in range(3):
        for kw in range(3):
            ok = ((hh + step * (kh - 1) >= 0) & (hh + step * (kh - 1) < H)
                  & (ww + step * (kw - 1) >= 0) & (ww + step * (kw - 1) < W))
            masks[3 * kh + kw] = ok.astype(np.float32).reshape(-1)
    return masks


def _upsample_select_matrix(H, W):
    """(H*W, H*W): rows at even (h, w) hold the align_corners=True bilinear
    weights mapping the (Hf, Wf) feature grid back to (H, W); other rows are 0.
    Folds the stride-2 downsample selection and the upsample into ONE matmul."""
    Hf, Wf = H // 2, W // 2
    a_up = np.kron(_bilinear_matrix(H, Hf), _bilinear_matrix(W, Wf)).T  # (Hf*Wf, H*W)
    a2 = np.zeros((H * W, H * W), np.float32)
    hf, wf = np.meshgrid(np.arange(Hf), np.arange(Wf), indexing="ij")
    a2[(2 * hf * W + 2 * wf).reshape(-1), :] = a_up
    return a2


# ---------------------------------------------------------------------------
# Fused Pallas kernel: conv1+ReLU -> maxpool2x2 -> conv2+ReLU -> bilinear up
# ---------------------------------------------------------------------------
def fused_encoder(x_nchw, w1, b1, w2, b2):
    """x_nchw: (N, Cin, H, W) f32.  w1: (9, C1, Cin), w2: (9, C2, C1), b: (C,).
       Returns (N, C2, H, W) f32, already bilinearly upsampled to (H, W)."""
    N, Cin, H, W = x_nchw.shape
    C1, C2 = w1.shape[1], w2.shape[1]
    HW = H * W

    # Two grid steps when possible so both v7x TensorCores get work; one fat
    # step otherwise (v5e/v6e have a single TC -- fewer, fatter steps win).
    G = 2 if (N % 2 == 0 and N >= 2) else 1
    NB = N // G

    # Block-diagonal (over the NB images of one step) conv weights so each conv
    # is ONE (rows, K) x (K, H*W) lane-dense MXU matmul.  bf16 MXU operands,
    # f32 accumulation; elementwise math stays f32 (v5e-safe).
    eye = jnp.eye(NB, dtype=jnp.float32)
    w1bd = jnp.concatenate([jnp.kron(eye, w1[t]) for t in range(9)],
                           axis=1).astype(jnp.bfloat16)          # (NB*C1, 9*NB*Cin)
    w2bd = jnp.concatenate([jnp.kron(eye, w2[t]) for t in range(9)],
                           axis=1).astype(jnp.bfloat16)          # (NB*C2, 9*NB*C1)
    b1f = jnp.tile(b1.reshape(C1, 1), (NB, 1))                   # (NB*C1, 1) f32
    b2f = jnp.tile(b2.reshape(C2, 1), (NB, 1))                   # (NB*C2, 1) f32

    mask1 = jnp.asarray(_conv_masks(H, W, 1))                    # (9, HW) f32
    mask2 = jnp.asarray(_conv_masks(H, W, 2))                    # (9, HW) f32
    a2 = jnp.asarray(_upsample_select_matrix(H, W)).astype(jnp.bfloat16)  # (HW, HW)

    # (N, Cin, H, W) -> (G, NB*Cin, HW): free row-major reshape, rows = (image, cin).
    x3d = x_nchw.reshape(G, NB * Cin, HW)

    def kernel(x_ref, w1_ref, b1_ref, w2_ref, b2_ref, m1_ref, m2_ref, a2_ref, o_ref):
        x = x_ref[0]                      # (NB*Cin, HW) f32
        m1 = m1_ref[...]
        m2 = m2_ref[...]

        def im2col(src, step, masks):
            # 3x3 taps as whole-array XLU lane rolls + boundary masks.
            pieces = []
            for kh in range(3):
                for kw in range(3):
                    t = 3 * kh + kw
                    s = step * ((kh - 1) * W + (kw - 1))
                    if s == 0:            # center tap: no shift, mask all-ones
                        pieces.append(src)
                    else:
                        pieces.append(pltpu.roll(src, (-s) % HW, 1) * masks[t:t + 1])
            return jnp.concatenate(pieces, axis=0)

        # conv1 3x3 (pad=1) + ReLU : one (NB*C1, 9*NB*Cin) x (9*NB*Cin, HW) matmul
        p1 = im2col(x, 1, m1).astype(jnp.bfloat16)
        f1 = jnp.dot(w1_ref[...], p1, preferred_element_type=jnp.float32)
        f1 = jnp.maximum(f1 + b1_ref[...], 0.0)                   # (NB*C1, HW)

        # 2x2 max-pool (stride 2), kept at full resolution in registers:
        # valid at even (h, w) anchors; odd positions hold don't-care values
        # that are annihilated later by the zero rows of a2.
        t0 = jnp.maximum(f1, pltpu.roll(f1, HW - 1, 1))           # max over w, w+1
        pooled = jnp.maximum(t0, pltpu.roll(t0, HW - W, 1))       # max over h, h+1

        # conv2 3x3 (pad=1) + ReLU on the pooled grid (taps stride by 2 in the
        # full-resolution flat index).
        p2 = im2col(pooled, 2, m2).astype(jnp.bfloat16)
        f2 = jnp.dot(w2_ref[...], p2, preferred_element_type=jnp.float32)
        f2 = jnp.maximum(f2 + b2_ref[...], 0.0)                   # (NB*C2, HW)

        # even-pixel selection + align_corners=True bilinear upsample: one
        # lane-dense matmul, output (NB*C2, HW) with 256-wide unmasked stores.
        o_ref[0] = jnp.dot(f2.astype(jnp.bfloat16), a2_ref[...],
                           preferred_element_type=jnp.float32)

    out = pl.pallas_call(
        kernel,
        out_shape=jax.ShapeDtypeStruct((G, NB * C2, HW), jnp.float32),
        grid=(G,),
        in_specs=[
            pl.BlockSpec((1, NB * Cin, HW), lambda g: (g, 0, 0)),
            pl.BlockSpec((NB * C1, 9 * NB * Cin), lambda g: (0, 0)),
            pl.BlockSpec((NB * C1, 1), lambda g: (0, 0)),
            pl.BlockSpec((NB * C2, 9 * NB * C1), lambda g: (0, 0)),
            pl.BlockSpec((NB * C2, 1), lambda g: (0, 0)),
            pl.BlockSpec((9, HW), lambda g: (0, 0)),
            pl.BlockSpec((9, HW), lambda g: (0, 0)),
            pl.BlockSpec((HW, HW), lambda g: (0, 0)),
        ],
        out_specs=pl.BlockSpec((1, NB * C2, HW), lambda g: (g, 0, 0)),
        compiler_params=pltpu.CompilerParams(dimension_semantics=("parallel",)),
    )(x3d, w1bd, b1f, w2bd, b2f, mask1, mask2, a2)

    return out.reshape(N, C2, H, W)       # free row-major reshape -> NCHW


# ---------------------------------------------------------------------------
# MetricSegNet wrapper (matches the PyTorch module's forward semantics)
# ---------------------------------------------------------------------------
def init_params(key, in_channels=3, c1=8, c2=16):
    k1, k2 = jax.random.split(key)
    # Conv weights stored tap-major: (tap=(kh,kw), cout, cin).
    w1 = 0.1 * jax.random.normal(k1, (9, c1, in_channels), jnp.float32)
    b1 = jnp.zeros((c1,), jnp.float32)
    w2 = 0.1 * jax.random.normal(k2, (9, c2, c1), jnp.float32)
    b2 = jnp.zeros((c2,), jnp.float32)
    return {"w1": w1, "b1": b1, "w2": w2, "b2": b2}


@jax.jit
def _encode(params, imgs_nchw):
    return fused_encoder(imgs_nchw, params["w1"], params["b1"],
                         params["w2"], params["b2"])              # (N, C2, H, W)


def metric_seg_net_forward(params, support_imgs, qry_imgs):
    """support_imgs: ways x shots x [B, 3, H, W];  qry_imgs: queries x [B, 3, H, W].
       Returns (support_fts, qry_fts) in NCHW, bilinearly upsampled to (H, W)."""
    n_ways, n_shots = len(support_imgs), len(support_imgs[0])
    B = support_imgs[0][0].shape[0]
    imgs_concat = jnp.concatenate(
        [jnp.concatenate(way, axis=0) for way in support_imgs]
        + [jnp.concatenate(qry_imgs, axis=0)], axis=0)            # (N, 3, H, W)
    fts_up = _encode(params, imgs_concat)                         # (N, C2, H, W)
    n_sup = n_ways * n_shots * B
    return fts_up[:n_sup], fts_up[n_sup:]


# ---------------------------------------------------------------------------
if __name__ == "__main__":
    key = jax.random.PRNGKey(0)
    kp, kd = jax.random.split(key)
    params = init_params(kp, in_channels=3, c1=8, c2=16)

    n_ways, n_shots, n_queries, B, H, W = 2, 1, 1, 2, 16, 16
    keys = jax.random.split(kd, n_ways * n_shots + n_queries)
    idx = 0
    support_imgs = []
    for _ in range(n_ways):
        shots = []
        for _ in range(n_shots):
            shots.append(jax.random.normal(keys[idx], (B, 3, H, W), jnp.float32))
            idx += 1
        support_imgs.append(shots)
    qry_imgs = []
    for _ in range(n_queries):
        qry_imgs.append(jax.random.normal(keys[idx], (B, 3, H, W), jnp.float32))
        idx += 1

    support_fts, qry_fts = metric_seg_net_forward(params, support_imgs, qry_imgs)
    jax.block_until_ready(support_fts)
    jax.block_until_ready(qry_fts)

    assert support_fts.shape == (n_ways * n_shots * B, 16, H, W)
    assert qry_fts.shape == (n_queries * B, 16, H, W)
    assert bool(jnp.all(jnp.isfinite(support_fts)))
    assert bool(jnp.all(jnp.isfinite(qry_fts)))
    print("KERNEL_OK")
</pallas_src>

<mosaic_0001>
module attributes {stable_mosaic.version = 11 : i64} {
  func.func @kernel(%arg0: i32, %arg1: memref<1x9x256xf32, #tpu.memory_space<vmem>>, %arg2: memref<24x81xbf16, #tpu.memory_space<vmem>>, %arg3: memref<24x1xf32, #tpu.memory_space<vmem>>, %arg4: memref<48x216xbf16, #tpu.memory_space<vmem>>, %arg5: memref<48x1xf32, #tpu.memory_space<vmem>>, %arg6: memref<9x256xf32, #tpu.memory_space<vmem>>, %arg7: memref<9x256xf32, #tpu.memory_space<vmem>>, %arg8: memref<256x256xbf16, #tpu.memory_space<vmem>>, %arg9: memref<1x48x256xf32, #tpu.memory_space<vmem>>) attributes {dimension_semantics = [#tpu.dimension_semantics<parallel>], iteration_bounds = array<i64: 2>, scalar_prefetch = 0 : i64, scratch_operands = 0 : i64, tpu.core_type = #tpu.core_type<tc>, window_params = [{transform_indices = @transform_0, window_bounds = array<i64: 1, 9, 256>}, {pipeline_mode = #tpu.pipeline_mode<synchronous>, transform_indices = @transform_1, window_bounds = array<i64: 24, 81>}, {pipeline_mode = #tpu.pipeline_mode<synchronous>, transform_indices = @transform_2, window_bounds = array<i64: 24, 1>}, {pipeline_mode = #tpu.pipeline_mode<synchronous>, transform_indices = @transform_3, window_bounds = array<i64: 48, 216>}, {pipeline_mode = #tpu.pipeline_mode<synchronous>, transform_indices = @transform_4, window_bounds = array<i64: 48, 1>}, {pipeline_mode = #tpu.pipeline_mode<synchronous>, transform_indices = @transform_5, window_bounds = array<i64: 9, 256>}, {pipeline_mode = #tpu.pipeline_mode<synchronous>, transform_indices = @transform_6, window_bounds = array<i64: 9, 256>}, {pipeline_mode = #tpu.pipeline_mode<synchronous>, transform_indices = @transform_7, window_bounds = array<i64: 256, 256>}, {transform_indices = @transform_8, window_bounds = array<i64: 1, 48, 256>}]} {
    %c0 = arith.constant 0 : index
    %c0_0 = arith.constant 0 : index
    %c0_1 = arith.constant 0 : index
    %0 = vector.load %arg1[%c0, %c0_0, %c0_1] : memref<1x9x256xf32, #tpu.memory_space<vmem>>, vector<1x9x256xf32>
    %1 = vector.shape_cast %0 : vector<1x9x256xf32> to vector<9x256xf32>
    %c0_2 = arith.constant 0 : index
    %c0_3 = arith.constant 0 : index
    %2 = vector.load %arg6[%c0_2, %c0_3] : memref<9x256xf32, #tpu.memory_space<vmem>>, vector<9x256xf32>
    %c0_4 = arith.constant 0 : index
    %c0_5 = arith.constant 0 : index
    %3 = vector.load %arg7[%c0_4, %c0_5] : memref<9x256xf32, #tpu.memory_space<vmem>>, vector<9x256xf32>
    %c17_i32 = arith.constant 17 : i32
    %4 = tpu.dynamic_rotate %1 by %c17_i32 dim 1 : vector<9x256xf32>, i32 -> vector<9x256xf32>
    %5 = vector.extract_strided_slice %2 {offsets = [0, 0], sizes = [1, 256], strides = [1, 1]} : vector<9x256xf32> to vector<1x256xf32>
    %6 = vector.broadcast %5 : vector<1x256xf32> to vector<9x256xf32>
    %7 = arith.mulf %4, %6 : vector<9x256xf32>
    %c16_i32 = arith.constant 16 : i32
    %8 = tpu.dynamic_rotate %1 by %c16_i32 dim 1 : vector<9x256xf32>, i32 -> vector<9x256xf32>
    %9 = vector.extract_strided_slice %2 {offsets = [1, 0], sizes = [1, 256], strides = [1, 1]} : vector<9x256xf32> to vector<1x256xf32>
    %10 = vector.broadcast %9 : vector<1x256xf32> to vector<9x256xf32>
    %11 = arith.mulf %8, %10 : vector<9x256xf32>
    %c15_i32 = arith.constant 15 : i32
    %12 = tpu.dynamic_rotate %1 by %c15_i32 dim 1 : vector<9x256xf32>, i32 -> vector<9x256xf32>
    %13 = vector.extract_strided_slice %2 {offsets = [2, 0], sizes = [1, 256], strides = [1, 1]} : vector<9x256xf32> to vector<1x256xf32>
    %14 = vector.broadcast %13 : vector<1x256xf32> to vector<9x256xf32>
    %15 = arith.mulf %12, %14 : vector<9x256xf32>
    %c1_i32 = arith.constant 1 : i32
    %16 = tpu.dynamic_rotate %1 by %c1_i32 dim 1 : vector<9x256xf32>, i32 -> vector<9x256xf32>
    %17 = vector.extract_strided_slice %2 {offsets = [3, 0], sizes = [1, 256], strides = [1, 1]} : vector<9x256xf32> to vector<1x256xf32>
    %18 = vector.broadcast %17 : vector<1x256xf32> to vector<9x256xf32>
    %19 = arith.mulf %16, %18 : vector<9x256xf32>
    %c255_i32 = arith.constant 255 : i32
    %20 = tpu.dynamic_rotate %1 by %c255_i32 dim 1 : vector<9x256xf32>, i32 -> vector<9x256xf32>
    %21 = vector.extract_strided_slice %2 {offsets = [5, 0], sizes = [1, 256], strides = [1, 1]} : vector<9x256xf32> to vector<1x256xf32>
    %22 = vector.broadcast %21 : vector<1x256xf32> to vector<9x256xf32>
    %23 = arith.mulf %20, %22 : vector<9x256xf32>
    %c241_i32 = arith.constant 241 : i32
    %24 = tpu.dynamic_rotate %1 by %c241_i32 dim 1 : vector<9x256xf32>, i32 -> vector<9x256xf32>
    %25 = vector.extract_strided_slice %2 {offsets = [6, 0], sizes = [1, 256], strides = [1, 1]} : vector<9x256xf32> to vector<1x256xf32>
    %26 = vector.broadcast %25 : vector<1x256xf32> to vector<9x256xf32>
    %27 = arith.mulf %24, %26 : vector<9x256xf32>
    %c240_i32 = arith.constant 240 : i32
    %28 = tpu.dynamic_rotate %1 by %c240_i32 dim 1 : vector<9x256xf32>, i32 -> vector<9x256xf32>
    %29 = vector.extract_strided_slice %2 {offsets = [7, 0], sizes = [1, 256], strides = [1, 1]} : vector<9x256xf32> to vector<1x256xf32>
    %30 = vector.broadcast %29 : vector<1x256xf32> to vector<9x256xf32>
    %31 = arith.mulf %28, %30 : vector<9x256xf32>
    %c239_i32 = arith.constant 239 : i32
    %32 = tpu.dynamic_rotate %1 by %c239_i32 dim 1 : vector<9x256xf32>, i32 -> vector<9x256xf32>
    %33 = vector.extract_strided_slice %2 {offsets = [8, 0], sizes = [1, 256], strides = [1, 1]} : vector<9x256xf32> to vector<1x256xf32>
    %34 = vector.broadcast %33 : vector<1x256xf32> to vector<9x256xf32>
    %35 = arith.mulf %32, %34 : vector<9x256xf32>
    %36 = tpu.concatenate %7, %11, %15, %19, %1, %23, %27, %31, %35 in 0 : vector<9x256xf32>, vector<9x256xf32>, vector<9x256xf32>, vector<9x256xf32>, vector<9x256xf32>, vector<9x256xf32>, vector<9x256xf32>, vector<9x256xf32>, vector<9x256xf32> -> vector<81x256xf32>
    %37 = arith.truncf %36 : vector<81x256xf32> to vector<81x256xbf16>
    %c0_6 = arith.constant 0 : index
    %c0_7 = arith.constant 0 : index
    %38 = vector.load %arg2[%c0_6, %c0_7] : memref<24x81xbf16, #tpu.memory_space<vmem>>, vector<24x81xbf16>
    %cst = arith.constant dense<0.000000e+00> : vector<24x256xf32>
    %39 = tpu.matmul %38, %37, %cst {dimension_numbers = #tpu.dot_dimension_numbers<[1], [0], [0], [1], [0, 0, 1, 1], [], []>} : vector<24x81xbf16>, vector<81x256xbf16>, vector<24x256xf32> -> vector<24x256xf32>
    %c0_8 = arith.constant 0 : index
    %c0_9 = arith.constant 0 : index
    %40 = vector.load %arg3[%c0_8, %c0_9] : memref<24x1xf32, #tpu.memory_space<vmem>>, vector<24x1xf32>
    %41 = vector.broadcast %40 : vector<24x1xf32> to vector<24x256xf32>
    %42 = arith.addf %39, %41 : vector<24x256xf32>
    %cst_10 = arith.constant 0.000000e+00 : f32
    %43 = vector.broadcast %cst_10 : f32 to vector<24x256xf32>
    %44 = arith.maximumf %42, %43 : vector<24x256xf32>
    %c255_i32_11 = arith.constant 255 : i32
    %45 = tpu.dynamic_rotate %44 by %c255_i32_11 dim 1 : vector<24x256xf32>, i32 -> vector<24x256xf32>
    %46 = arith.maximumf %44, %45 : vector<24x256xf32>
    %c240_i32_12 = arith.constant 240 : i32
    %47 = tpu.dynamic_rotate %46 by %c240_i32_12 dim 1 : vector<24x256xf32>, i32 -> vector<24x256xf32>
    %48 = arith.maximumf %46, %47 : vector<24x256xf32>
    %c34_i32 = arith.constant 34 : i32
    %49 = tpu.dynamic_rotate %48 by %c34_i32 dim 1 : vector<24x256xf32>, i32 -> vector<24x256xf32>
    %50 = vector.extract_strided_slice %3 {offsets = [0, 0], sizes = [1, 256], strides = [1, 1]} : vector<9x256xf32> to vector<1x256xf32>
    %51 = vector.broadcast %50 : vector<1x256xf32> to vector<24x256xf32>
    %52 = arith.mulf %49, %51 : vector<24x256xf32>
    %c32_i32 = arith.constant 32 : i32
    %53 = tpu.dynamic_rotate %48 by %c32_i32 dim 1 : vector<24x256xf32>, i32 -> vector<24x256xf32>
    %54 = vector.extract_strided_slice %3 {offsets = [1, 0], sizes = [1, 256], strides = [1, 1]} : vector<9x256xf32> to vector<1x256xf32>
    %55 = vector.broadcast %54 : vector<1x256xf32> to vector<24x256xf32>
    %56 = arith.mulf %53, %55 : vector<24x256xf32>
    %c30_i32 = arith.constant 30 : i32
    %57 = tpu.dynamic_rotate %48 by %c30_i32 dim 1 : vector<24x256xf32>, i32 -> vector<24x256xf32>
    %58 = vector.extract_strided_slice %3 {offsets = [2, 0], sizes = [1, 256], strides = [1, 1]} : vector<9x256xf32> to vector<1x256xf32>
    %59 = vector.broadcast %58 : vector<1x256xf32> to vector<24x256xf32>
    %60 = arith.mulf %57, %59 : vector<24x256xf32>
    %c2_i32 = arith.constant 2 : i32
    %61 = tpu.dynamic_rotate %48 by %c2_i32 dim 1 : vector<24x256xf32>, i32 -> vector<24x256xf32>
    %62 = vector.extract_strided_slice %3 {offsets = [3, 0], sizes = [1, 256], strides = [1, 1]} : vector<9x256xf32> to vector<1x256xf32>
    %63 = vector.broadcast %62 : vector<1x256xf32> to vector<24x256xf32>
    %64 = arith.mulf %61, %63 : vector<24x256xf32>
    %c254_i32 = arith.constant 254 : i32
    %65 = tpu.dynamic_rotate %48 by %c254_i32 dim 1 : vector<24x256xf32>, i32 -> vector<24x256xf32>
    %66 = vector.extract_strided_slice %3 {offsets = [5, 0], sizes = [1, 256], strides = [1, 1]} : vector<9x256xf32> to vector<1x256xf32>
    %67 = vector.broadcast %66 : vector<1x256xf32> to vector<24x256xf32>
    %68 = arith.mulf %65, %67 : vector<24x256xf32>
    %c226_i32 = arith.constant 226 : i32
    %69 = tpu.dynamic_rotate %48 by %c226_i32 dim 1 : vector<24x256xf32>, i32 -> vector<24x256xf32>
    %70 = vector.extract_strided_slice %3 {offsets = [6, 0], sizes = [1, 256], strides = [1, 1]} : vector<9x256xf32> to vector<1x256xf32>
    %71 = vector.broadcast %70 : vector<1x256xf32> to vector<24x256xf32>
    %72 = arith.mulf %69, %71 : vector<24x256xf32>
    %c224_i32 = arith.constant 224 : i32
    %73 = tpu.dynamic_rotate %48 by %c224_i32 dim 1 : vector<24x256xf32>, i32 -> vector<24x256xf32>
    %74 = vector.extract_strided_slice %3 {offsets = [7, 0], sizes = [1, 256], strides = [1, 1]} : vector<9x256xf32> to vector<1x256xf32>
    %75 = vector.broadcast %74 : vector<1x256xf32> to vector<24x256xf32>
    %76 = arith.mulf %73, %75 : vector<24x256xf32>
    %c222_i32 = arith.constant 222 : i32
    %77 = tpu.dynamic_rotate %48 by %c222_i32 dim 1 : vector<24x256xf32>, i32 -> vector<24x256xf32>
    %78 = vector.extract_strided_slice %3 {offsets = [8, 0], sizes = [1, 256], strides = [1, 1]} : vector<9x256xf32> to vector<1x256xf32>
    %79 = vector.broadcast %78 : vector<1x256xf32> to vector<24x256xf32>
    %80 = arith.mulf %77, %79 : vector<24x256xf32>
    %81 = tpu.concatenate %52, %56, %60, %64, %48, %68, %72, %76, %80 in 0 : vector<24x256xf32>, vector<24x256xf32>, vector<24x256xf32>, vector<24x256xf32>, vector<24x256xf32>, vector<24x256xf32>, vector<24x256xf32>, vector<24x256xf32>, vector<24x256xf32> -> vector<216x256xf32>
    %82 = arith.truncf %81 : vector<216x256xf32> to vector<216x256xbf16>
    %c0_13 = arith.constant 0 : index
    %c0_14 = arith.constant 0 : index
    %83 = vector.load %arg4[%c0_13, %c0_14] : memref<48x216xbf16, #tpu.memory_space<vmem>>, vector<48x216xbf16>
    %cst_15 = arith.constant dense<0.000000e+00> : vector<48x256xf32>
    %84 = tpu.matmul %83, %82, %cst_15 {dimension_numbers = #tpu.dot_dimension_numbers<[1], [0], [0], [1], [0, 0, 1, 1], [], []>} : vector<48x216xbf16>, vector<216x256xbf16>, vector<48x256xf32> -> vector<48x256xf32>
    %c0_16 = arith.constant 0 : index
    %c0_17 = arith.constant 0 : index
    %85 = vector.load %arg5[%c0_16, %c0_17] : memref<48x1xf32, #tpu.memory_space<vmem>>, vector<48x1xf32>
    %86 = vector.broadcast %85 : vector<48x1xf32> to vector<48x256xf32>
    %87 = arith.addf %84, %86 : vector<48x256xf32>
    %cst_18 = arith.constant 0.000000e+00 : f32
    %88 = vector.broadcast %cst_18 : f32 to vector<48x256xf32>
    %89 = arith.maximumf %87, %88 : vector<48x256xf32>
    %90 = arith.truncf %89 : vector<48x256xf32> to vector<48x256xbf16>
    %c0_19 = arith.constant 0 : index
    %c0_20 = arith.constant 0 : index
    %91 = vector.load %arg8[%c0_19, %c0_20] : memref<256x256xbf16, #tpu.memory_space<vmem>>, vector<256x256xbf16>
    %cst_21 = arith.constant dense<0.000000e+00> : vector<48x256xf32>
    %92 = tpu.matmul %90, %91, %cst_21 {dimension_numbers = #tpu.dot_dimension_numbers<[1], [0], [0], [1], [0, 0, 1, 1], [], []>} : vector<48x256xbf16>, vector<256x256xbf16>, vector<48x256xf32> -> vector<48x256xf32>
    %c0_22 = arith.constant 0 : index
    %c0_23 = arith.constant 0 : index
    %c0_24 = arith.constant 0 : index
    %93 = vector.load %arg9[%c0_22, %c0_23, %c0_24] : memref<1x48x256xf32, #tpu.memory_space<vmem>>, vector<1x48x256xf32>
    %94 = vector.shape_cast %93 : vector<1x48x256xf32> to vector<48x256xf32>
    %95 = vector.shape_cast %92 : vector<48x256xf32> to vector<1x48x256xf32>
    tpu.vector_store %arg9[%c0_22, %c0_23, %c0_24], %95 {strides = array<i32>} : memref<1x48x256xf32, #tpu.memory_space<vmem>>, vector<1x48x256xf32>,
    return
  }
  func.func @transform_0(%arg0: i32) -> (i32, i32, i32) {
    %c0_i32 = arith.constant 0 : i32
    %c0_i32_0 = arith.constant 0 : i32
    %c0_i32_1 = arith.constant 0 : i32
    return %arg0, %c0_i32, %c0_i32_0 : i32, i32, i32
  }
  func.func @transform_1(%arg0: i32) -> (i32, i32) {
    %c0_i32 = arith.constant 0 : i32
    %c0_i32_0 = arith.constant 0 : i32
    %c0_i32_1 = arith.constant 0 : i32
    return %c0_i32, %c0_i32_0 : i32, i32
  }
  func.func @transform_2(%arg0: i32) -> (i32, i32) {
    %c0_i32 = arith.constant 0 : i32
    %c0_i32_0 = arith.constant 0 : i32
    %c0_i32_1 = arith.constant 0 : i32
    return %c0_i32, %c0_i32_0 : i32, i32
  }
  func.func @transform_3(%arg0: i32) -> (i32, i32) {
    %c0_i32 = arith.constant 0 : i32
    %c0_i32_0 = arith.constant 0 : i32
    %c0_i32_1 = arith.constant 0 : i32
    return %c0_i32, %c0_i32_0 : i32, i32
  }
  func.func @transform_4(%arg0: i32) -> (i32, i32) {
    %c0_i32 = arith.constant 0 : i32
    %c0_i32_0 = arith.constant 0 : i32
    %c0_i32_1 = arith.constant 0 : i32
    return %c0_i32, %c0_i32_0 : i32, i32
  }
  func.func @transform_5(%arg0: i32) -> (i32, i32) {
    %c0_i32 = arith.constant 0 : i32
    %c0_i32_0 = arith.constant 0 : i32
    %c0_i32_1 = arith.constant 0 : i32
    return %c0_i32, %c0_i32_0 : i32, i32
  }
  func.func @transform_6(%arg0: i32) -> (i32, i32) {
    %c0_i32 = arith.constant 0 : i32
    %c0_i32_0 = arith.constant 0 : i32
    %c0_i32_1 = arith.constant 0 : i32
    return %c0_i32, %c0_i32_0 : i32, i32
  }
  func.func @transform_7(%arg0: i32) -> (i32, i32) {
    %c0_i32 = arith.constant 0 : i32
    %c0_i32_0 = arith.constant 0 : i32
    %c0_i32_1 = arith.constant 0 : i32
    return %c0_i32, %c0_i32_0 : i32, i32
  }
  func.func @transform_8(%arg0: i32) -> (i32, i32, i32) {
    %c0_i32 = arith.constant 0 : i32
    %c0_i32_0 = arith.constant 0 : i32
    %c0_i32_1 = arith.constant 0 : i32
    return %arg0, %c0_i32, %c0_i32_0 : i32, i32, i32
  }
}

</mosaic_0001>

<bundles_post_ra>
// kernel: _encode.1
= control target key start
LH: loop header
LB: loop body
LE: loop exit
PB: predicated region body
PF: predicated region fallthrough
CT: control target
= control target key end

     0   :  { %s1799_s27 = smov 0   ;;  %s2535_s0 = inlined_call_operand.vmem [shape: f32[2,9,256], index: 0, kind: input, shape index: {}]   ;;  %s2536_s1 = inlined_call_operand.vmem [shape: bf16[24,81], index: 1, kind: input, shape index: {}]   ;;  %s2537_s2 = inlined_call_operand.vmem [shape: f32[24,1], index: 2, kind: input, shape index: {}]   ;;  %s2538_s3 = inlined_call_operand.vmem [shape: bf16[48,216], index: 3, kind: input, shape index: {}]   ;;  %s2539_s4 = inlined_call_operand.vmem [shape: f32[48,1], index: 4, kind: input, shape index: {}]   ;;  %s2540_s5 = inlined_call_operand.vmem [shape: f32[9,256], index: 5, kind: input, shape index: {}]   ;;  %s2541_s6 = inlined_call_operand.vmem [shape: f32[9,256], index: 6, kind: input, shape index: {}]   ;;  %s2542_s7 = inlined_call_operand.vmem [shape: bf16[256,256], index: 7, kind: input, shape index: {}]   ;;  %s2543_s8 = inlined_call_operand.vmem [shape: f32[2,48,256], index: 8, kind: output, shape index: {}]  }
   0x1 LB: > { %s1581_s28 = sadd.s32 4294967295, %s1735_s27   ;;  %p1585_p0 = scmp.ge.s32.totalorder %s1735_s27, 1  ;;  %s1735_s27 = sphi %s1799_s27, %s18_s27  }
   0x2   : > { %p262_p1 = scmp.lt.s32.totalorder %s1735_s27, 3 }
   0x4   : > { %p263_p2 = pnand %p1585_p0, %p262_p1 }
   0x5   : > { %p296_p3 = scmp.lt.s32.totalorder (!%p263_p2), %s1581_s28, 1  ;;  %s1737_s11 = smov (!%p263_p2), 17   ;;  %vm570_vm0 = vcmask (!%p263_p2), 1043456   ;;  %v1744_v10 = vmov (!%p263_p2), 0   ;;  %v655_v11 = vld [vmem:[%s2537_s2] sm:$0xff] (!%p263_p2)  ;;  %v656_v12 = vld [vmem:[%s2537_s2 + $0x8] sm:$0xff] (!%p263_p2)  ;;  %v327_v14 = vlaneseq (!%p263_p2) }
   0x6   : > { %266 = sbr.rel (%p263_p2) target bundleno = 1333 (0x535), region = 52  ;;  %s1738_s12 = smov (!%p263_p2), 16   ;;  %728 = vmatprep.mubr.bf16.mxu1 (!%p263_p2), %v1744_v10  ;;  %1668 = vset.pattern.permute.xlu0 (!%p263_p2), %v1744_v10  ;;  %v657_v13 = vld [vmem:[%s2537_s2 + $0x10] sm:$0xff] (!%p263_p2)  ;;  %v1875_v18 = vld [vmem:[%s2540_s5] sm:$0xff] (!%p263_p2)  ;;  %v1880_v19 = vld [vmem:[%s2540_s5 + $0x8] sm:$0xff] (!%p263_p2)  ;;  %vm525_vm3 = vcmask (!%p263_p2), 1040384  }
   0x7   : > { %s1739_s13 = smov (!%p263_p2), 15   ;;  %s1740_s14 = smov (!%p263_p2), 1   ;;  %1669 = vset.pattern.permute.xlu1 (!%p263_p2), %v1744_v10  ;;  %v1865_v15 = vshrl.u32 (!%p263_p2), %v327_v14, 7  ;;  %v1867_v16 = vand.u32 (!%p263_p2), 127, %v327_v14  ;;  %vm540_vm6 = vcmask (!%p263_p2), 1041408   ;;  %vm555_vm8 = vcmask (!%p263_p2), 1042432  }
   0x8   : > { %s1741_s15 = smov (!%p263_p2), 127   ;;  %s1742_s16 = smov (!%p263_p2), 113   ;;  %vm585_vm9 = vcmask (!%p263_p2), 1044480   ;;  %vm600_vm12 = vcmask (!%p263_p2), 1045504   ;;  %vm615_vm14 = vcmask (!%p263_p2), 1046528   ;;  %vm681_vm15 = vcmask (!%p263_p2), 662528  }
   0x9   : > { %s1743_s17 = smov (!%p263_p2), 112   ;;  %s1745_s18 = smov (!%p263_p2), 111   ;;  %v1870_v17 = vsub.s32 (!%p263_p2), 1, %v1865_v15  ;;  %v1883_v22 = vsub.s32 (!%p263_p2), 0, %v1865_v15  ;;  %vm329_vm1 = vcmp.lt.s32.totalorder (!%p263_p2), %v1867_v16, 17  ;;  %vm354_vm2 = vcmp.lt.s32.totalorder (!%p263_p2), %v1867_v16, 16 }
   0xa   : > { %v1916_v51 = vsub.s32 (!%p263_p2), 2, %v1865_v15  ;;  %v1923_v56 = vsub.s32 (!%p263_p2), 3, %v1865_v15  ;;  %vm379_vm4 = vcmp.lt.s32.totalorder (!%p263_p2), %v1867_v16, 15  ;;  %vm404_vm5 = vcmp.lt.s32.totalorder (!%p263_p2), %v1867_v16, 1  ;;  %s1747_s19 = smov (!%p263_p2), 34   ;;  %s1749_s20 = smov (!%p263_p2), 126  }
   0xb   : > { %v362_v23 = vrot.slane (!%p263_p2), %v1875_v18, %v1870_v17  ;;  %v366_v24 = vrot.slane (!%p263_p2), %v1880_v19, %v1870_v17  ;;  %v337_v25 = vrot.slane (!%p263_p2), %v1875_v18, %v1883_v22  ;;  %v341_v28 = vrot.slane (!%p263_p2), %v1880_v19, %v1883_v22  ;;  %s1750_s21 = smov (!%p263_p2), 30   ;;  %s1751_s22 = smov (!%p263_p2), 98  }
   0xc   : > { %v387_v57 = vrot.slane (!%p263_p2), %v1875_v18, %v1916_v51  ;;  %v391_v58 = vrot.slane (!%p263_p2), %v1880_v19, %v1916_v51  ;;  %v412_v63 = vrot.slane (!%p263_p2), %v1875_v18, %v1923_v56  ;;  %vm429_vm7 = vcmp.lt.s32.totalorder (!%p263_p2), %v1867_v16, 127  ;;  %s1752_s23 = smov (!%p263_p2), 96   ;;  %s1753_s24 = smov (!%p263_p2), 94  }
   0xd   : > { %s2545_s28 = smov (!%p296_p3, %s1581_s28), 1  ;;  %vm454_vm10 = vcmp.lt.s32.totalorder %v1867_v16, 113  ;;  %vm479_vm11 = vcmp.lt.s32.totalorder %v1867_v16, 112  ;;  %vm504_vm13 = vcmp.lt.s32.totalorder %v1867_v16, 111 }
   0xe   : > { %s1641_s29 = sshll.u32 %s2545_s28, 5 }
   0xf   : > { %s300_s10 = scalar_lea.vmem %s2535_s0, %s1641_s29 }
  0x10   : > { %v309_v0 = vld [vmem:[%s300_s10 + $0x10] sm:$0x1]  ;;  %v1813_v1 = vld [vmem:[%s300_s10] sm:$0xff]  ;;  %v310_v2 = vld [vmem:[%s300_s10 + $0x18] sm:$0x1] }
  0x11   : > { %321 = vrot.lane.b32.xlu1 %v309_v0, %s1737_s11  ;;  %346 = vrot.lane.b32.xlu0 %v1813_v1, %s1738_s12  ;;  %v1816_v3 = vld [vmem:[%s300_s10 + $0x8] sm:$0xff]  ;;  %v575_v5 = vrot.slane %v310_v2, 4  ;;  %v571_v6 = vrot.slane %v1813_v1, 4  ;;  %v573_v7 = vrot.slane %v309_v0, 4 }
  0x12   : > { %v572_v4 = vrot.slane %v1816_v3, 4 }
  0x13   : > { %v1835_v9 = vsel %vm570_vm0, %v571_v6, %v573_v7 }
  0x14   : > { %v1830_v8 = vsel %vm570_vm0, %v572_v4, %v575_v5 }
  0x15   : > { %325 = vrot.lane.b32.xlu1 %v310_v2, %s1737_s11  ;;  %350 = vrot.lane.b32.xlu0 %v1816_v3, %s1738_s12 }
  0x19   : > { %323 = vrot.lane.b32.xlu1 %v1816_v3, %s1737_s11  ;;  %319 = vrot.lane.b32.xlu0 %v1813_v1, %s1737_s11 }
  0x1d   : > { %352 = vrot.lane.b32.xlu1 %v310_v2, %s1738_s12  ;;  %348 = vrot.lane.b32.xlu0 %v309_v0, %s1738_s12 }
  0x21   : > { %373 = vrot.lane.b32.xlu1 %v309_v0, %s1739_s13  ;;  %371 = vrot.lane.b32.xlu0 %v1813_v1, %s1739_s13 }
  0x25   : > { %377 = vrot.lane.b32.xlu1 %v310_v2, %s1739_s13  ;;  %375 = vrot.lane.b32.xlu0 %v1816_v3, %s1739_s13 }
  0x29   : > { %400 = vrot.lane.b32.xlu1 %v1816_v3, %s1740_s14  ;;  %396 = vrot.lane.b32.xlu0 %v1813_v1, %s1740_s14 }
  0x2d   : > { %402 = vrot.lane.b32.xlu1 %v310_v2, %s1740_s14  ;;  %398 = vrot.lane.b32.xlu0 %v309_v0, %s1740_s14 }
  0x31   : > { %425 = vrot.lane.b32.xlu1 %v1816_v3, %s1741_s15  ;;  %421 = vrot.lane.b32.xlu0 %v1813_v1, %s1741_s15 }
  0x35   : > { %427 = vrot.lane.b32.xlu1 %v310_v2, %s1741_s15  ;;  %423 = vrot.lane.b32.xlu0 %v309_v0, %s1741_s15 }
  0x39   : > { %448 = vrot.lane.b32.xlu1 %v309_v0, %s1742_s16  ;;  %446 = vrot.lane.b32.xlu0 %v1813_v1, %s1742_s16 }
  0x3d   : > { %452 = vrot.lane.b32.xlu1 %v310_v2, %s1742_s16  ;;  %450 = vrot.lane.b32.xlu0 %v1816_v3, %s1742_s16 }
  0x41   : > { %475 = vrot.lane.b32.xlu1 %v1816_v3, %s1743_s17  ;;  %471 = vrot.lane.b32.xlu0 %v1813_v1, %s1743_s17 }
  0x45   : > { %477 = vrot.lane.b32.xlu1 %v310_v2, %s1743_s17  ;;  %473 = vrot.lane.b32.xlu0 %v309_v0, %s1743_s17 }
  0x49   : > { %500 = vrot.lane.b32.xlu1 %v1816_v3, %s1745_s18  ;;  %496 = vrot.lane.b32.xlu0 %v1813_v1, %s1745_s18 }
  0x4d   : > { %502 = vrot.lane.b32.xlu1 %v310_v2, %s1745_s18  ;;  %498 = vrot.lane.b32.xlu0 %v309_v0, %s1745_s18  ;;  %v416_v0 = vrot.slane %v1880_v19, %v1923_v56 }
  0x51   : > { %660 = vperm.xlu0 %1668, %v655_v11   ;;  %665 = vperm.xlu1 %1669, %v656_v12  }
  0x55   : > { %670 = vperm.xlu1 %1669, %v657_v13  }
  0x83   : > { %v322_v20 = vpop.permute.xlu1 %321  ;;  %v347_v21 = vpop.permute.xlu0 %346 }
  0x87   : > { %v326_v26 = vpop.permute.xlu1 %325  ;;  %v351_v27 = vpop.permute.xlu0 %350 }
  0x88   : > { %v331_v29 = vsel %vm329_vm1, %v322_v20, %v326_v26  ;;  %v333_v30 = vsel %vm329_vm1, %v326_v26, %v322_v20  ;;  %v355_v31 = vsel %vm354_vm2, %v347_v21, %v351_v27  ;;  %v357_v32 = vsel %vm354_vm2, %v351_v27, %v347_v21 }
  0x89   : > { %v1903_v33 = vmul.f32 %v362_v23, %v357_v32  ;;  %v1905_v34 = vmul.f32 %v366_v24, %v355_v31  ;;  %v344_v35 = vmul.f32 %v337_v25, %v333_v30  ;;  %v345_v40 = vmul.f32 %v341_v28, %v331_v29 }
  0x8b   : > { %v526_v36 = vrot.slane %v1903_v33, 7  ;;  %v527_v37 = vrot.slane %v1905_v34, 7  ;;  %v324_v38 = vpop.permute.xlu1 %323  ;;  %v320_v39 = vpop.permute.xlu0 %319 }
  0x8c   : > { %v330_v41 = vsel %vm329_vm1, %v320_v39, %v324_v38  ;;  %v332_v42 = vsel %vm329_vm1, %v324_v38, %v320_v39  ;;  %vm1162_vm1 = vcmask 719872  }
  0x8d   : > { %v342_v43 = vmul.f32 %v337_v25, %v332_v42  ;;  %v343_v44 = vmul.f32 %v341_v28, %v330_v41  ;;  %v627_v45 = vsel %vm525_vm3, %v345_v40, %v527_v37  ;;  %v626_v46 = vsel %vm525_vm3, %v344_v35, %v526_v36 }
  0x8f   : > { %v353_v47 = vpop.permute.xlu1 %352  ;;  %v349_v48 = vpop.permute.xlu0 %348  ;;  %v641_v49 = vpack.c.bf16 %v627_v45, %v343_v44  ;;  %v640_v50 = vpack.c.bf16 %v626_v46, %v342_v43 }
  0x90   : > { %v356_v52 = vsel %vm354_vm2, %v349_v48, %v353_v47  ;;  %v358_v53 = vsel %vm354_vm2, %v353_v47, %v349_v48  ;;  %vm813_vm2 = vcmp.lt.s32.totalorder %v1867_v16, 34 }
  0x91   : > { %696 = vmatprep.subr.bf16.mxu1 %v641_v49  ;;  %v369_v59 = vmul.f32 %v362_v23, %v358_v53  ;;  %v370_v60 = vmul.f32 %v366_v24, %v356_v52  ;;  %v1936_v24 = vsub.s32 5, %v1865_v15 }
  0x92   : > { %697 = vmatpush1.bf16.msra.mxu1 %v640_v50 }
  0x93   : > { %v374_v54 = vpop.permute.xlu1 %373  ;;  %v372_v55 = vpop.permute.xlu0 %371  ;;  %v528_v21 = vrot.slane %v369_v59, 7  ;;  %v530_v23 = vrot.slane %v370_v60, 7  ;;  %v437_v35 = vrot.slane %v1875_v18, %v1936_v24  ;;  %v441_v38 = vrot.slane %v1880_v19, %v1936_v24 }
  0x95   : > { %v531_v39 = vsel %vm525_vm3, %v527_v37, %v530_v23  ;;  %v529_v40 = vsel %vm525_vm3, %v526_v36, %v528_v21 }
  0x97   : > { %v378_v61 = vpop.permute.xlu1 %377  ;;  %v376_v62 = vpop.permute.xlu0 %375 }
  0x98   : > { %v381_v2 = vsel %vm379_vm4, %v374_v54, %v378_v61  ;;  %v383_v5 = vsel %vm379_vm4, %v378_v61, %v374_v54  ;;  %v380_v7 = vsel %vm379_vm4, %v372_v55, %v376_v62  ;;  %v382_v11 = vsel %vm379_vm4, %v376_v62, %v372_v55 }
  0x99   : > { %v394_v12 = vmul.f32 %v387_v57, %v383_v5  ;;  %v395_v13 = vmul.f32 %v391_v58, %v381_v2  ;;  %v392_v14 = vmul.f32 %v387_v57, %v382_v11  ;;  %v393_v20 = vmul.f32 %v391_v58, %v380_v7 }
  0x9a   : > { %vm879_vm4 = vcmp.lt.s32.totalorder %v1867_v16, 30 }
  0x9b   : > { %v545_v25 = vrot.slane %v395_v13, 6  ;;  %v542_v26 = vrot.slane %v393_v20, 6  ;;  %v401_v27 = vpop.permute.xlu1 %400  ;;  %v397_v28 = vpop.permute.xlu0 %396  ;;  %v543_v29 = vrot.slane %v394_v12, 6  ;;  %v541_v30 = vrot.slane %v392_v14, 6 }
  0x9c   : > { %v405_v31 = vsel %vm404_vm5, %v397_v28, %v401_v27  ;;  %v407_v32 = vsel %vm404_vm5, %v401_v27, %v397_v28  ;;  %v1966_v14 = vsub.s32 6, %v1865_v15 }
  0x9d   : > { %v417_v33 = vmul.f32 %v412_v63, %v407_v32  ;;  %v418_v34 = vmul.f32 %v416_v0, %v405_v31  ;;  %v546_v45 = vsel %vm540_vm6, %v542_v26, %v545_v25  ;;  %v629_v46 = vsel %vm540_vm6, %v531_v39, %v542_v26 }
  0x9e   : > { %v544_v49 = vsel %vm540_vm6, %v541_v30, %v543_v29  ;;  %v628_v37 = vsel %vm540_vm6, %v529_v40, %v541_v30  ;;  %v1983_v30 = vsub.s32 7, %v1865_v15  ;;  %v462_v1 = vrot.slane %v1875_v18, %v1966_v14 }
  0x9f   : > { %v556_v41 = vrot.slane %v417_v33, 5  ;;  %v557_v42 = vrot.slane %v418_v34, 5  ;;  %v403_v43 = vpop.permute.xlu1 %402  ;;  %v399_v44 = vpop.permute.xlu0 %398  ;;  %vm945_vm6 = vcmp.lt.s32.totalorder %v1867_v16, 126 }
  0xa0   : > { %v406_v47 = vsel %vm404_vm5, %v399_v44, %v403_v43  ;;  %v408_v48 = vsel %vm404_vm5, %v403_v43, %v399_v44  ;;  %v487_v15 = vrot.slane %v1875_v18, %v1983_v30  ;;  %v491_v33 = vrot.slane %v1880_v19, %v1983_v30 }
  0xa1   : > { %v419_v50 = vmul.f32 %v412_v63, %v408_v48  ;;  %v420_v36 = vmul.f32 %v416_v0, %v406_v47  ;;  %v631_v52 = vsel %vm555_vm8, %v546_v45, %v557_v42  ;;  %v630_v53 = vsel %vm555_vm8, %v544_v49, %v556_v41 }
  0xa2   : > { %v643_v54 = vpack.c.bf16 %v631_v52, %v629_v46  ;;  %v642_v55 = vpack.c.bf16 %v630_v53, %v628_v37  ;;  %vm912_vm5 = vcmp.lt.s32.totalorder %v1867_v16, 2 }
  0xa3   : > { %v558_v57 = vrot.slane %v419_v50, 5  ;;  %v560_v58 = vrot.slane %v420_v36, 5  ;;  %v426_v59 = vpop.permute.xlu1 %425  ;;  %v422_v60 = vpop.permute.xlu0 %421 }
  0xa4   : > { %v430_v61 = vsel %vm429_vm7, %v422_v60, %v426_v59  ;;  %v432_v62 = vsel %vm429_vm7, %v426_v59, %v422_v60  ;;  %698 = vmatprep.subr.bf16.mxu1 %v643_v54 }
  0xa5   : > { %v442_v2 = vmul.f32 %v437_v35, %v430_v61  ;;  %v443_v63 = vmul.f32 %v441_v38, %v432_v62  ;;  %699 = vmatpush1.bf16.msra.mxu1 %v642_v55  ;;  %v561_v0 = vsel %vm555_vm8, %v557_v42, %v560_v58  ;;  %v559_v5 = vsel %vm555_vm8, %v556_v41, %v558_v57 }
  0xa6   : > { %v633_v20 = vsel %vm570_vm0, %v561_v0, %v572_v4  ;;  %v632_v23 = vsel %vm570_vm0, %v559_v5, %v571_v6  ;;  %v466_v6 = vrot.slane %v1880_v19, %v1966_v14  ;;  %vm1011_vm8 = vcmp.lt.s32.totalorder %v1867_v16, 96 }
  0xa7   : > { %v586_v7 = vrot.slane %v442_v2, 3  ;;  %v587_v11 = vrot.slane %v443_v63, 3  ;;  %v428_v12 = vpop.permute.xlu1 %427  ;;  %v424_v13 = vpop.permute.xlu0 %423 }
  0xa8   : > { %v431_v28 = vsel %vm429_vm7, %v424_v13, %v428_v12  ;;  %v433_v3 = vsel %vm429_vm7, %v428_v12, %v424_v13  ;;  %v1589_v13 = vld [vmem:[%s2540_s5 + $0x10] ss:$0 sm:$0xff] }
  0xa9   : > { %v635_v21 = vsel %vm585_vm9, %v1830_v8, %v587_v11  ;;  %v634_v25 = vsel %vm585_vm9, %v1835_v9, %v586_v7  ;;  %v444_v8 = vmul.f32 %v437_v35, %v431_v28  ;;  %v445_v9 = vmul.f32 %v441_v38, %v433_v3 }
  0xaa   : > { %v645_v26 = vpack.c.bf16 %v635_v21, %v633_v20  ;;  %v644_v27 = vpack.c.bf16 %v634_v25, %v632_v23  ;;  %v1590_v20 = vld [vmem:[%s2540_s5 + $0x18] ss:$0 sm:$0xff] }
  0xab   : > { %v449_v29 = vpop.permute.xlu1 %448  ;;  %v447_v4 = vpop.permute.xlu0 %446  ;;  %v588_v35 = vrot.slane %v444_v8, 3  ;;  %v590_v38 = vrot.slane %v445_v9, 3 }
  0xac   : > { %700 = vmatprep.subr.bf16.mxu1 %v645_v26 }
  0xad   : > { %701 = vmatpush1.bf16.msra.mxu1 %v644_v27  ;;  %v591_v53 = vsel %vm585_vm9, %v587_v11, %v590_v38  ;;  %v589_v54 = vsel %vm585_vm9, %v586_v7, %v588_v35  ;;  %v1670_v35 = vld [vmem:[%s2536_s1] sm:$0xff]   ;;  %v1671_v38 = vld [vmem:[%s2536_s1 + $0x8] ss:$0 sps:$4 sm:$0xff]   ;;  %vm1044_vm9 = vcmp.lt.s32.totalorder %v1867_v16, 94 }
  0xaf   : > { %v453_v31 = vpop.permute.xlu1 %452  ;;  %v451_v32 = vpop.permute.xlu0 %450 }
  0xb0   : > { %v456_v34 = vsel %vm454_vm10, %v449_v29, %v453_v31  ;;  %v458_v39 = vsel %vm454_vm10, %v453_v31, %v449_v29  ;;  %v455_v40 = vsel %vm454_vm10, %v447_v4, %v451_v32  ;;  %v457_v41 = vsel %vm454_vm10, %v451_v32, %v447_v4 }
  0xb1   : > { %v469_v42 = vmul.f32 %v462_v1, %v456_v34  ;;  %v470_v43 = vmul.f32 %v466_v6, %v458_v39  ;;  %v467_v44 = vmul.f32 %v462_v1, %v455_v40  ;;  %v468_v45 = vmul.f32 %v466_v6, %v457_v41 }
  0xb2   : > { %v689_v41 = vsel %vm525_vm3, 65535, %v1744_v10  ;;  %vm846_vm3 = vcmp.lt.s32.totalorder %v1867_v16, 32 }
  0xb3   : > { %v605_v46 = vrot.slane %v470_v43, 2  ;;  %v602_v47 = vrot.slane %v468_v45, 2  ;;  %v476_v48 = vpop.permute.xlu1 %475  ;;  %v472_v49 = vpop.permute.xlu0 %471  ;;  %v603_v37 = vrot.slane %v469_v42, 2  ;;  %v601_v18 = vrot.slane %v467_v44, 2 }
  0xb4   : > { %v480_v19 = vsel %vm479_vm11, %v472_v49, %v476_v48  ;;  %v482_v50 = vsel %vm479_vm11, %v476_v48, %v472_v49 }
  0xb5   : > { %v492_v36 = vmul.f32 %v487_v15, %v480_v19  ;;  %v493_v52 = vmul.f32 %v491_v33, %v482_v50  ;;  %v606_v60 = vsel %vm600_vm12, %v602_v47, %v605_v46  ;;  %v637_v61 = vsel %vm600_vm12, %v591_v53, %v602_v47 }
  0xb6   : > { %v604_v63 = vsel %vm600_vm12, %v601_v18, %v603_v37  ;;  %v636_v0 = vsel %vm600_vm12, %v589_v54, %v601_v18 }
  0xb7   : > { %v616_v55 = vrot.slane %v492_v36, 1  ;;  %v617_v57 = vrot.slane %v493_v52, 1  ;;  %v478_v58 = vpop.permute.xlu1 %477  ;;  %v474_v59 = vpop.permute.xlu0 %473 }
  0xb8   : > { %v481_v62 = vsel %vm479_vm11, %v474_v59, %v478_v58  ;;  %v483_v2 = vsel %vm479_vm11, %v478_v58, %v474_v59 }
  0xb9   : > { %v494_v5 = vmul.f32 %v487_v15, %v481_v62  ;;  %v495_v7 = vmul.f32 %v491_v33, %v483_v2  ;;  %v639_v11 = vsel %vm615_vm14, %v606_v60, %v617_v57  ;;  %v638_v12 = vsel %vm615_vm14, %v604_v63, %v616_v55 }
  0xba   : > { %v647_v21 = vpack.c.bf16 %v639_v11, %v637_v61  ;;  %v646_v23 = vpack.c.bf16 %v638_v12, %v636_v0 }
  0xbb   : > { %v618_v25 = vrot.slane %v494_v5, 1  ;;  %v620_v26 = vrot.slane %v495_v7, 1  ;;  %v501_v27 = vpop.permute.xlu1 %500  ;;  %v497_v28 = vpop.permute.xlu0 %496 }
  0xbc   : > { %v505_v3 = vsel %vm504_vm13, %v497_v28, %v501_v27  ;;  %v507_v29 = vsel %vm504_vm13, %v501_v27, %v497_v28  ;;  %702 = vmatprep.subr.bf16.mxu1 %v647_v21 }
  0xbd   : > { %v517_v4 = vmul.f32 %v1589_v13, %v505_v3  ;;  %v518_v1 = vmul.f32 %v1590_v20, %v507_v29  ;;  %703 = vmatpush1.bf16.msra.mxu1 %v646_v23  ;;  %v621_v6 = vsel %vm615_vm14, %v617_v57, %v620_v26  ;;  %v619_v8 = vsel %vm615_vm14, %v616_v55, %v618_v25 }
  0xbf   : > { %v503_v9 = vpop.permute.xlu1 %502  ;;  %v499_v31 = vpop.permute.xlu0 %498  ;;  %v649_v32 = vpack.c.bf16 %v518_v1, %v621_v6  ;;  %v648_v15 = vpack.c.bf16 %v517_v4, %v619_v8 }
  0xc0   : > { %v506_v33 = vsel %vm504_vm13, %v499_v31, %v503_v9  ;;  %v508_v34 = vsel %vm504_vm13, %v503_v9, %v499_v31 }
  0xc1   : > { %v519_v39 = vmul.f32 %v1589_v13, %v506_v33  ;;  %v520_v40 = vmul.f32 %v1590_v20, %v508_v34  ;;  %704 = vmatprep.subr.bf16.mxu1 %v649_v32 }
  0xc2   : > { %705 = vmatpush1.bf16.msra.mxu1 %v648_v15 }
  0xc3   : > { %v650_v42 = vpack.c.bf16 %v519_v39, %v519_v39  ;;  %v651_v43 = vpack.c.bf16 %v520_v40, %v520_v40 }
  0xc5   : > { %v694_v44 = vand.u32 %v689_v41, %v651_v43  ;;  %v691_v45 = vand.u32 %v689_v41, %v650_v42 }
  0xc7   : > { %706 = vmatprep.subr.bf16.mxu1 %v694_v44 }
  0xc8   : > { %707 = vmatpush1.bf16.msra.mxu1 %v691_v45 }
  0xcb   : > { %1593 = vmatmul.mubr.msk.bf16.vlgmr.msra.gmra.mrb[0].mxu1 %vm681_vm15, %v1670_v35 }
  0xcc   : > { %738 = vmatprep.mubr.bf16.mxu1 %v1744_v10 }
  0xd0   : > { %v661_v46 = vpop.permute.xlu0 %660  ;;  %v666_v48 = vpop.permute.xlu1 %665 }
  0xd3   : > { %1594 = vmatmul.mubr.msk.bf16.gmra.mrb[4].mxu1 %vm681_vm15, %v1671_v38 }
  0xd4   : > { %v671_v10 = vpop.permute.xlu1 %670 }
 0x19e   : > { %v730_v47 = vpop.f32.mrb[0].mxu1 }
 0x19f   : > { %v731_v49 = vadd.f32 %v730_v47, %v661_v46  ;;  %v732_v37 = vpop.f32.mrb[1].mxu1 }
 0x1a0   : > { %v734_v18 = vpop.f32.mrb[2].mxu1  ;;  %v733_v50 = vadd.f32 %v732_v37, %v661_v46  ;;  %v1100_v37 = vld [vmem:[%s2539_s4 + $0x8] sm:$0xff] }
 0x1a1   : > { %v747_v19 = vmax.f32 %v731_v49, 0.0  ;;  %v735_v36 = vadd.f32 %v734_v18, %v666_v48  ;;  %v736_v52 = vpop.f32.mrb[3].mxu1  ;;  %v1674_v49 = vld [vmem:[%s2538_s3 + $0x4] ss:$8 sps:$4 sm:$0xff]  }
 0x1a2   : > { %v737_v54 = vadd.f32 %v736_v52, %v666_v48  ;;  %v748_v55 = vmax.f32 %v733_v50, 0.0  ;;  %1604 = vmatprep.mubr.msk.bf16.mxu1 %vm1162_vm1, %v1674_v49  ;;  %v1099_v18 = vld [vmem:[%s2539_s4] sm:$0xff]  ;;  %v1101_v50 = vld [vmem:[%s2539_s4 + $0x10] sm:$0xff] }
 0x1a3   : > { %v749_v53 = vmax.f32 %v735_v36, 0.0  ;;  %753 = vrot.lane.b32.xlu0 %v747_v19, %s1741_s15  ;;  %v1104_v36 = vld [vmem:[%s2539_s4 + $0x28] sm:$0xff]  ;;  %v1103_v52 = vld [vmem:[%s2539_s4 + $0x20] sm:$0xff]  ;;  %v1708_v49 = vld [vmem:[%s2542_s7 + $0x94] ss:$8 sps:$4 sm:$0xff]  }
 0x1a4   : > { %v750_v58 = vmax.f32 %v737_v54, 0.0  ;;  %v1683_v54 = vld [vmem:[%s2542_s7] ss:$8 sps:$4 sm:$0xff]  }
 0x1a5   : > { %755 = vrot.lane.b32.xlu1 %v749_v53, %s1741_s15 }
 0x1a6   : > { %v740_v57 = vpop.f32.mrb[4].mxu1 }
 0x1a7   : > { %759 = vrot.lane.b32.xlu0 %v748_v55, %s1741_s15  ;;  %v741_v59 = vadd.f32 %v740_v57, %v671_v10  ;;  %v742_v60 = vpop.f32.mrb[5].mxu1  ;;  %v1687_v57 = vld [vmem:[%s2542_s7 + $0x24] ss:$8 sps:$4 sm:$0xff]  }
 0x1a8   : > { %v743_v61 = vadd.f32 %v742_v60, %v671_v10  ;;  %v744_v62 = vpop.f32.mrb[6].mxu1  ;;  %v1684_v10 = vld [vmem:[%s2542_s7 + $0x14] ss:$8 sps:$4 sm:$0xff]  }
 0x1a9   : > { %v751_v2 = vmax.f32 %v741_v59, 0.0  ;;  %761 = vrot.lane.b32.xlu1 %v750_v58, %s1741_s15  ;;  %v745_v63 = vpop.f32.mrb[7].mxu1  ;;  %v1690_v59 = vld [vmem:[%s2542_s7 + $0x34] ss:$8 sps:$4 sm:$0xff]   ;;  %v1692_v62 = vld [vmem:[%s2542_s7 + $0x30] ss:$8 sps:$4 sm:$0xff]  }
 0x1aa   : > { %v752_v0 = vmax.f32 %v743_v61, 0.0 }
 0x1ab   : > { %757 = vrot.lane.b32.xlu0 %v751_v2, %s1741_s15 }
 0x1ad   : > { %763 = vrot.lane.b32.xlu1 %v752_v0, %s1741_s15  ;;  %s1746_s15 = smov 32  }
 0x215   : > { %v754_v5 = vpop.permute.xlu0 %753 }
 0x217   : > { %v756_v7 = vpop.permute.xlu1 %755 }
 0x219   : > { %v760_v11 = vpop.permute.xlu0 %759 }
 0x21a   : > { %v765_v12 = vsel %vm429_vm7, %v754_v5, %v760_v11  ;;  %v768_v21 = vsel %vm429_vm7, %v760_v11, %v754_v5  ;;  %v1695_v5 = vld [vmem:[%s2542_s7 + $0x40] ss:$8 sps:$4 sm:$0xff]  }
 0x21b   : > { %v771_v13 = vmax.f32 %v747_v19, %v765_v12  ;;  %v762_v20 = vpop.permute.xlu1 %761  ;;  %v772_v28 = vmax.f32 %v748_v55, %v768_v21  ;;  %v1102_v19 = vld [vmem:[%s2539_s4 + $0x18] sm:$0xff]  ;;  %v2235_v21 = vld [vmem:[%s2541_s6] sm:$0xff] }
 0x21c   : > { %v766_v23 = vsel %vm429_vm7, %v756_v7, %v762_v20  ;;  %v769_v27 = vsel %vm429_vm7, %v762_v20, %v756_v7  ;;  %v1686_v55 = vld [vmem:[%s2542_s7 + $0x10] ss:$8 sps:$4 sm:$0xff]   ;;  %v1696_v7 = vld [vmem:[%s2542_s7 + $0x54] ss:$8 sps:$4 sm:$0xff]   ;;  %v1699_v20 = vld [vmem:[%s2542_s7 + $0x64] ss:$8 sps:$4 sm:$0xff]  }
 0x21d   : > { %v773_v25 = vmax.f32 %v749_v53, %v766_v23  ;;  %777 = vrot.lane.b32.xlu0 %v771_v13, %s1743_s17  ;;  %v758_v26 = vpop.permute.xlu0 %757  ;;  %v774_v4 = vmax.f32 %v750_v58, %v769_v27  ;;  %v1681_v53 = vld [vmem:[%s2542_s7 + $0x4] ss:$8 sps:$4 sm:$0xff]   ;;  %v1689_v58 = vld [vmem:[%s2542_s7 + $0x20] ss:$8 sps:$4 sm:$0xff]  }
 0x21e   : > { %1451 = vmatprep.subr.bf16.mxu0 %v1681_v53  ;;  %v2240_v23 = vld [vmem:[%s2541_s6 + $0x8] sm:$0xff] }
 0x21f   : > { %779 = vrot.lane.b32.xlu1 %v773_v25, %s1743_s17  ;;  %v764_v3 = vpop.permute.xlu1 %763  ;;  %1452 = vmatpush1.bf16.msra.mxu0 %v1683_v54  ;;  %v1701_v27 = vld [vmem:[%s2542_s7 + $0x60] ss:$8 sps:$4 sm:$0xff]   ;;  %v1714_v54 = vld [vmem:[%s2542_s7 + $0xb4] ss:$8 sps:$4 sm:$0xff]  }
 0x220   : > { %v767_v29 = vsel %vm429_vm7, %v758_v26, %v764_v3  ;;  %v770_v1 = vsel %vm429_vm7, %v764_v3, %v758_v26  ;;  %1453 = vmatprep.subr.bf16.mxu0 %v1684_v10  ;;  %v2254_v3 = vrot.slane %v2240_v23, %v1883_v22  ;;  %v1713_v53 = vld [vmem:[%s2542_s7 + $0xa0] ss:$8 sps:$4 sm:$0xff]   ;;  %vm978_vm7 = vcmp.lt.s32.totalorder %v1867_v16, 98  ;;  %v1675_v16 = vld [vmem:[%s2538_s3 + $0x14] ss:$8 sps:$4 sm:$0xff]  }
 0x221   : > { %783 = vrot.lane.b32.xlu0 %v772_v28, %s1743_s17  ;;  %v775_v6 = vmax.f32 %v751_v2, %v767_v29  ;;  %v776_v8 = vmax.f32 %v752_v0, %v770_v1  ;;  %v1693_v2 = vld [vmem:[%s2542_s7 + $0x44] ss:$8 sps:$4 sm:$0xff]   ;;  %v1702_v29 = vld [vmem:[%s2542_s7 + $0x74] ss:$8 sps:$4 sm:$0xff]  }
 0x223   : > { %785 = vrot.lane.b32.xlu1 %v774_v4, %s1743_s17  ;;  %1454 = vmatpush1.bf16.msra.mxu0 %v1686_v55 }
 0x224   : > { %1455 = vmatprep.subr.bf16.mxu0 %v1687_v57  ;;  %v1716_v57 = vld [vmem:[%s2542_s7 + $0xb0] ss:$8 sps:$4 sm:$0xff]  }
 0x225   : > { %781 = vrot.lane.b32.xlu0 %v775_v6, %s1743_s17 }
 0x227   : > { %787 = vrot.lane.b32.xlu1 %v776_v8, %s1743_s17  ;;  %s1748_s17 = smov 2   ;;  %1456 = vmatpush1.bf16.msra.mxu0 %v1689_v58  ;;  %v1717_v58 = vld [vmem:[%s2542_s7 + $0xc4] ss:$8 sps:$4 sm:$0xff]  }
 0x228   : > { %1457 = vmatprep.subr.bf16.mxu0 %v1690_v59 }
 0x22b   : > { %1458 = vmatpush1.bf16.msra.mxu0 %v1692_v62  ;;  %v1719_v62 = vld [vmem:[%s2542_s7 + $0xc0] ss:$8 sps:$4 sm:$0xff]  }
 0x22c   : > { %1459 = vmatprep.subr.bf16.mxu0 %v1693_v2  ;;  %v1720_v2 = vld [vmem:[%s2542_s7 + $0xd4] ss:$8 sps:$4 sm:$0xff]  }
 0x22f   : > { %1460 = vmatpush1.bf16.msra.mxu0 %v1695_v5 }
 0x230   : > { %1461 = vmatprep.subr.bf16.mxu0 %v1696_v7 }
 0x28f   : > { %v778_v9 = vpop.permute.xlu0 %777 }
 0x291   : > { %v780_v33 = vpop.permute.xlu1 %779 }
 0x293   : > { %v784_v31 = vpop.permute.xlu0 %783 }
 0x294   : > { %v789_v32 = vsel %vm479_vm11, %v778_v9, %v784_v31  ;;  %v792_v15 = vsel %vm479_vm11, %v784_v31, %v778_v9  ;;  %v1704_v31 = vld [vmem:[%s2542_s7 + $0x70] ss:$8 sps:$4 sm:$0xff]  }
 0x295   : > { %v2065_v34 = vmax.f32 %v771_v13, %v789_v32  ;;  %v2067_v39 = vmax.f32 %v772_v28, %v792_v15  ;;  %v786_v40 = vpop.permute.xlu1 %785  ;;  %v1698_v13 = vld [vmem:[%s2542_s7 + $0x50] ss:$8 sps:$4 sm:$0xff]   ;;  %v2250_v28 = vrot.slane %v2235_v21, %v1883_v22 }
 0x296   : > { %v790_v41 = vsel %vm479_vm11, %v780_v33, %v786_v40  ;;  %v793_v43 = vsel %vm479_vm11, %v786_v40, %v780_v33  ;;  %1462 = vmatpush1.bf16.msra.mxu0 %v1698_v13  ;;  %v860_v13 = vrot.slane %v2240_v23, %v1870_v17 }
 0x297   : > { %840 = vrot.lane.b32.xlu1 %v2067_v39, %s1746_s15  ;;  %801 = vrot.lane.b32.xlu0 %v2065_v34, %s1747_s19  ;;  %v2083_v42 = vmax.f32 %v773_v25, %v790_v41  ;;  %v2091_v44 = vmax.f32 %v774_v4, %v793_v43  ;;  %v782_v35 = vpop.permute.xlu0 %781  ;;  %v1705_v41 = vld [vmem:[%s2542_s7 + $0x84] ss:$8 sps:$4 sm:$0xff]  }
 0x298   : > { %1463 = vmatprep.subr.bf16.mxu0 %v1699_v20 }
 0x299   : > { %v788_v45 = vpop.permute.xlu1 %787 }
 0x29a   : > { %v794_v38 = vsel %vm479_vm11, %v788_v45, %v782_v35  ;;  %v791_v47 = vsel %vm479_vm11, %v782_v35, %v788_v45  ;;  %1464 = vmatpush1.bf16.msra.mxu0 %v1701_v27 }
 0x29b   : > { %906 = vrot.lane.b32.xlu1 %v2067_v39, %s1748_s17  ;;  %807 = vrot.lane.b32.xlu0 %v2067_v39, %s1747_s19  ;;  %v2107_v46 = vmax.f32 %v776_v8, %v794_v38  ;;  %v2115_v48 = vmax.f32 %v775_v6, %v791_v47  ;;  %v1707_v47 = vld [vmem:[%s2542_s7 + $0x80] ss:$8 sps:$4 sm:$0xff]  }
 0x29c   : > { %1465 = vmatprep.subr.bf16.mxu0 %v1702_v29 }
 0x29e   : > { %1466 = vmatpush1.bf16.msra.mxu0 %v1704_v31 }
 0x29f   : > { %939 = vrot.lane.b32.xlu1 %v2067_v39, %s1749_s20  ;;  %834 = vrot.lane.b32.xlu0 %v2065_v34, %s1746_s15 }
 0x2a0   : > { %1467 = vmatprep.subr.bf16.mxu0 %v1705_v41 }
 0x2a2   : > { %1468 = vmatpush1.bf16.msra.mxu0 %v1707_v47 }
 0x2a3   : > { %803 = vrot.lane.b32.xlu1 %v2083_v42, %s1747_s19  ;;  %867 = vrot.lane.b32.xlu0 %v2065_v34, %s1750_s21 }
 0x2a4   : > { %1469 = vmatprep.subr.bf16.mxu0 %v1708_v49 }
 0x2a7   : > { %809 = vrot.lane.b32.xlu1 %v2091_v44, %s1747_s19  ;;  %873 = vrot.lane.b32.xlu0 %v2067_v39, %s1750_s21 }
 0x2ab   : > { %869 = vrot.lane.b32.xlu1 %v2083_v42, %s1750_s21  ;;  %900 = vrot.lane.b32.xlu0 %v2065_v34, %s1748_s17 }
 0x2af   : > { %875 = vrot.lane.b32.xlu1 %v2091_v44, %s1750_s21  ;;  %933 = vrot.lane.b32.xlu0 %v2065_v34, %s1749_s20 }
 0x2b3   : > { %836 = vrot.lane.b32.xlu0 %v2083_v42, %s1746_s15  ;;  %811 = vrot.lane.b32.xlu1 %v2107_v46, %s1747_s19 }
 0x2b7   : > { %842 = vrot.lane.b32.xlu0 %v2091_v44, %s1746_s15  ;;  %838 = vrot.lane.b32.xlu1 %v2115_v48, %s1746_s15 }
 0x2bb   : > { %902 = vrot.lane.b32.xlu0 %v2083_v42, %s1748_s17  ;;  %844 = vrot.lane.b32.xlu1 %v2107_v46, %s1746_s15 }
 0x2bf   : > { %908 = vrot.lane.b32.xlu0 %v2091_v44, %s1748_s17  ;;  %968 = vrot.lane.b32.xlu1 %v2083_v42, %s1751_s22 }
 0x2c3   : > { %974 = vrot.lane.b32.xlu1 %v2091_v44, %s1751_s22  ;;  %805 = vrot.lane.b32.xlu0 %v2115_v48, %s1747_s19 }
 0x2c7   : > { %1005 = vrot.lane.b32.xlu1 %v2067_v39, %s1752_s23  ;;  %935 = vrot.lane.b32.xlu0 %v2083_v42, %s1749_s20 }
 0x2cb   : > { %877 = vrot.lane.b32.xlu1 %v2107_v46, %s1750_s21  ;;  %941 = vrot.lane.b32.xlu0 %v2091_v44, %s1749_s20 }
 0x2cf   : > { %904 = vrot.lane.b32.xlu1 %v2115_v48, %s1748_s17  ;;  %871 = vrot.lane.b32.xlu0 %v2115_v48, %s1750_s21  ;;  %s1642_s21 = smul.u32 96, %s2545_s28 }
 0x2d3   : > { %910 = vrot.lane.b32.xlu1 %v2107_v46, %s1748_s17  ;;  %966 = vrot.lane.b32.xlu0 %v2065_v34, %s1751_s22 }
 0x2d7   : > { %937 = vrot.lane.b32.xlu1 %v2115_v48, %s1749_s20  ;;  %972 = vrot.lane.b32.xlu0 %v2067_v39, %s1751_s22 }
 0x2db   : > { %943 = vrot.lane.b32.xlu1 %v2107_v46, %s1749_s20  ;;  %999 = vrot.lane.b32.xlu0 %v2065_v34, %s1752_s23 }
 0x2df   : > { %1034 = vrot.lane.b32.xlu1 %v2083_v42, %s1753_s24  ;;  %1001 = vrot.lane.b32.xlu0 %v2083_v42, %s1752_s23 }
 0x2e3   : > { %976 = vrot.lane.b32.xlu1 %v2107_v46, %s1751_s22  ;;  %1007 = vrot.lane.b32.xlu0 %v2091_v44, %s1752_s23 }
 0x2e7   : > { %1003 = vrot.lane.b32.xlu1 %v2115_v48, %s1752_s23  ;;  %970 = vrot.lane.b32.xlu0 %v2115_v48, %s1751_s22 }
 0x2eb   : > { %1009 = vrot.lane.b32.xlu1 %v2107_v46, %s1752_s23  ;;  %1032 = vrot.lane.b32.xlu0 %v2065_v34, %s1753_s24 }
 0x2ef   : > { %1040 = vrot.lane.b32.xlu1 %v2091_v44, %s1753_s24  ;;  %1038 = vrot.lane.b32.xlu0 %v2067_v39, %s1753_s24 }
 0x2f3   : > { %1042 = vrot.lane.b32.xlu1 %v2107_v46, %s1753_s24  ;;  %1036 = vrot.lane.b32.xlu0 %v2115_v48, %s1753_s24  ;;  %s305_s24 = scalar_lea.vmem %s2543_s8, %s1642_s21 }
 0x2f7   : > { %1112 = vperm.xlu1 %1669, %v1100_v37   ;;  %1107 = vperm.xlu0 %1668, %v1099_v18  }
 0x2fb   : > { %1122 = vperm.xlu1 %1669, %v1102_v19   ;;  %1117 = vperm.xlu0 %1668, %v1101_v50   ;;  %v1710_v19 = vld [vmem:[%s2542_s7 + $0x90] ss:$8 sps:$4 sm:$0xff]   ;;  %v1711_v50 = vld [vmem:[%s2542_s7 + $0xa4] ss:$8 sps:$4 sm:$0xff]  }
 0x2fc   : > { %1470 = vmatpush1.bf16.msra.mxu0 %v1710_v19 }
 0x2fd   : > { %1471 = vmatprep.subr.bf16.mxu0 %v1711_v50 }
 0x2ff   : > { %1132 = vperm.xlu1 %1669, %v1104_v36   ;;  %1127 = vperm.xlu0 %1668, %v1103_v52  }
 0x300   : > { %1472 = vmatpush1.bf16.msra.mxu0 %v1713_v53 }
 0x301   : > { %1473 = vmatprep.subr.bf16.mxu0 %v1714_v54 }
 0x304   : > { %1474 = vmatpush1.bf16.msra.mxu0 %v1716_v57 }
 0x305   : > { %1475 = vmatprep.subr.bf16.mxu0 %v1717_v58  ;;  %v922_v58 = vrot.slane %v2235_v21, %v1923_v56 }
 0x308   : > { %1476 = vmatpush1.bf16.msra.mxu0 %v1719_v62 }
 0x309   : > { %v2206_v60 = vpop.permute.xlu1 %840  ;;  %v802_v61 = vpop.permute.xlu0 %801  ;;  %1477 = vmatprep.subr.bf16.mxu0 %v1720_v2 }
 0x30d   : > { %v2214_v63 = vpop.permute.xlu1 %906  ;;  %v808_v0 = vpop.permute.xlu0 %807 }
 0x30e   : > { %v814_v4 = vsel %vm813_vm2, %v802_v61, %v808_v0  ;;  %v817_v1 = vsel %vm813_vm2, %v808_v0, %v802_v61  ;;  %v856_v0 = vrot.slane %v2235_v21, %v1870_v17 }
 0x30f   : > { %v828_v32 = vmul.f32 %v2250_v28, %v817_v1  ;;  %v829_v15 = vmul.f32 %v2254_v3, %v814_v4 }
 0x311   : > { %v2222_v11 = vpop.permute.xlu1 %939  ;;  %v2224_v12 = vpop.permute.xlu0 %834 }
 0x312   : > { %v850_v20 = vsel %vm846_vm3, %v2206_v60, %v2224_v12 }
 0x313   : > { %v861_v29 = vmul.f32 %v856_v0, %v850_v20 }
 0x315   : > { %v804_v25 = vpop.permute.xlu1 %803  ;;  %v2243_v26 = vpop.permute.xlu0 %867 }
 0x319   : > { %v810_v6 = vpop.permute.xlu1 %809  ;;  %v2263_v8 = vpop.permute.xlu0 %873 }
 0x31a   : > { %v815_v9 = vsel %vm813_vm2, %v804_v25, %v810_v6  ;;  %v818_v22 = vsel %vm813_vm2, %v810_v6, %v804_v25  ;;  %v847_v25 = vsel %vm846_vm3, %v2224_v12, %v2206_v60  ;;  %v883_v54 = vsel %vm879_vm4, %v2263_v8, %v2243_v26 }
 0x31b   : > { %v830_v33 = vmul.f32 %v2250_v28, %v818_v22  ;;  %v831_v40 = vmul.f32 %v2254_v3, %v815_v9  ;;  %v862_v1 = vmul.f32 %v860_v13, %v847_v25 }
 0x31d   : > { %v1065_v43 = vpack.c.bf16 %v830_v33, %v828_v32  ;;  %v2279_v45 = vpop.permute.xlu1 %869  ;;  %v2281_v35 = vpop.permute.xlu0 %900  ;;  %v1066_v38 = vpack.c.bf16 %v831_v40, %v829_v15  ;;  %v893_v15 = vrot.slane %v2240_v23, %v1916_v51 }
 0x31f   : > { %1178 = vmatprep.subr.bf16.mxu1 %v1066_v38 }
 0x320   : > { %1179 = vmatpush1.bf16.msra.mxu1 %v1065_v43 }
 0x321   : > { %v876_v37 = vpop.permute.xlu1 %875  ;;  %v2289_v18 = vpop.permute.xlu0 %933 }
 0x322   : > { %v881_v33 = vsel %vm879_vm4, %v2279_v45, %v876_v37  ;;  %v884_v19 = vsel %vm879_vm4, %v876_v37, %v2279_v45 }
 0x323   : > { %v897_v50 = vmul.f32 %v893_v15, %v881_v33 }
 0x325   : > { %v812_v36 = vpop.permute.xlu1 %811  ;;  %v837_v52 = vpop.permute.xlu0 %836 }
 0x329   : > { %v839_v10 = vpop.permute.xlu1 %838  ;;  %v843_v55 = vpop.permute.xlu0 %842 }
 0x32a   : > { %v848_v6 = vsel %vm846_vm3, %v837_v52, %v843_v55  ;;  %v851_v40 = vsel %vm846_vm3, %v843_v55, %v837_v52  ;;  %v889_v52 = vrot.slane %v2235_v21, %v1916_v51  ;;  %v926_v51 = vrot.slane %v2240_v23, %v1923_v56 }
 0x32b   : > { %v864_v41 = vmul.f32 %v860_v13, %v848_v6  ;;  %v863_v53 = vmul.f32 %v856_v0, %v851_v40 }
 0x32c   : > { %v896_v45 = vmul.f32 %v889_v52, %v884_v19  ;;  %v894_v62 = vmul.f32 %v889_v52, %v883_v54 }
 0x32d   : > { %v845_v59 = vpop.permute.xlu1 %844  ;;  %v2309_v61 = vpop.permute.xlu0 %902 }
 0x32e   : > { %v849_v27 = vsel %vm846_vm3, %v839_v10, %v845_v59  ;;  %v852_v12 = vsel %vm846_vm3, %v845_v59, %v839_v10 }
 0x32f   : > { %v866_v22 = vmul.f32 %v860_v13, %v849_v27  ;;  %v1071_v13 = vpack.c.bf16 %v896_v45, %v894_v62 }
 0x331   : > { %v2320_v5 = vpop.permute.xlu1 %968  ;;  %v2322_v7 = vpop.permute.xlu0 %908 }
 0x335   : > { %v2337_v4 = vpop.permute.xlu1 %974  ;;  %v806_v17 = vpop.permute.xlu0 %805 }
 0x336   : > { %v816_v9 = vsel %vm813_vm2, %v806_v17, %v812_v36  ;;  %v819_v60 = vsel %vm813_vm2, %v812_v36, %v806_v17  ;;  %v1070_v36 = vpack.c.bf16 %v866_v22, %v864_v41 }
 0x337   : > { %v832_v31 = vmul.f32 %v2250_v28, %v819_v60  ;;  %v833_v32 = vmul.f32 %v2254_v3, %v816_v9  ;;  %v880_v28 = vsel %vm879_vm4, %v2243_v26, %v2263_v8  ;;  %v865_v3 = vmul.f32 %v856_v0, %v852_v12 }
 0x338   : > { %v895_v10 = vmul.f32 %v893_v15, %v880_v28  ;;  %v913_v26 = vsel %vm912_vm5, %v2281_v35, %v2214_v63  ;;  %v916_v8 = vsel %vm912_vm5, %v2214_v63, %v2281_v35  ;;  %v914_v63 = vsel %vm912_vm5, %v2309_v61, %v2322_v7 }
 0x339   : > { %v1067_v43 = vpack.c.bf16 %v861_v29, %v832_v31  ;;  %v2356_v38 = vpop.permute.xlu1 %1005  ;;  %v2358_v47 = vpop.permute.xlu0 %935  ;;  %v1068_v49 = vpack.c.bf16 %v862_v1, %v833_v32  ;;  %v1069_v37 = vpack.c.bf16 %v865_v3, %v863_v53  ;;  %v927_v25 = vmul.f32 %v922_v58, %v916_v8 }
 0x33a   : > { %v1072_v59 = vpack.c.bf16 %v897_v50, %v895_v10  ;;  %v928_v27 = vmul.f32 %v926_v51, %v913_v26  ;;  %v917_v35 = vsel %vm912_vm5, %v2322_v7, %v2309_v61  ;;  %v959_v12 = vrot.slane %v2240_v23, %v1936_v24 }
 0x33b   : > { %1180 = vmatprep.subr.bf16.mxu1 %v1068_v49  ;;  %v929_v32 = vmul.f32 %v922_v58, %v917_v35  ;;  %v949_v7 = vsel %vm945_vm6, %v2222_v11, %v2289_v18  ;;  %v955_v28 = vrot.slane %v2235_v21, %v1936_v24  ;;  %v946_v3 = vsel %vm945_vm6, %v2289_v18, %v2222_v11 }
 0x33c   : > { %1181 = vmatpush1.bf16.msra.mxu1 %v1067_v43  ;;  %v961_v19 = vmul.f32 %v959_v12, %v949_v7  ;;  %v1078_v50 = vpack.c.bf16 %v2091_v44, %v2067_v39  ;;  %v1077_v11 = vpack.c.bf16 %v2083_v42, %v2065_v34 }
 0x33d   : > { %v878_v55 = vpop.permute.xlu1 %877  ;;  %1182 = vmatprep.subr.bf16.mxu1 %v1070_v36  ;;  %v2374_v57 = vpop.permute.xlu0 %941  ;;  %v960_v53 = vmul.f32 %v955_v28, %v946_v3 }
 0x33e   : > { %v950_v24 = vsel %vm945_vm6, %v2374_v57, %v2358_v47  ;;  %v1080_v18 = vpack.c.bf16 %v961_v19, %v2107_v46  ;;  %v947_v34 = vsel %vm945_vm6, %v2358_v47, %v2374_v57  ;;  %v983_v46 = vsel %vm978_vm7, %v2337_v4, %v2320_v5 }
 0x33f   : > { %v963_v42 = vmul.f32 %v959_v12, %v950_v24  ;;  %v988_v47 = vrot.slane %v2235_v21, %v1966_v14  ;;  %v962_v57 = vmul.f32 %v955_v28, %v947_v34 }
 0x340   : > { %1183 = vmatpush1.bf16.msra.mxu1 %v1069_v37 }
 0x341   : > { %v905_v2 = vpop.permute.xlu1 %904  ;;  %1184 = vmatprep.subr.bf16.mxu1 %v1072_v59  ;;  %v872_v0 = vpop.permute.xlu0 %871 }
 0x342   : > { %v882_v56 = vsel %vm879_vm4, %v872_v0, %v878_v55  ;;  %v885_v20 = vsel %vm879_vm4, %v878_v55, %v872_v0  ;;  %v992_v55 = vrot.slane %v2240_v23, %v1966_v14  ;;  %v1025_v14 = vrot.slane %v2240_v23, %v1983_v30 }
 0x343   : > { %v898_v29 = vmul.f32 %v889_v52, %v885_v20  ;;  %v899_v17 = vmul.f32 %v893_v15, %v882_v56  ;;  %v930_v15 = vmul.f32 %v926_v51, %v914_v63  ;;  %v1021_v20 = vrot.slane %v2235_v21, %v1983_v30 }
 0x344   : > { %1185 = vmatpush1.bf16.msra.mxu1 %v1071_v13  ;;  %v996_v8 = vmul.f32 %v992_v55, %v983_v46 }
 0x345   : > { %v1073_v1 = vpack.c.bf16 %v927_v25, %v898_v29  ;;  %v911_v6 = vpop.permute.xlu1 %910  ;;  %v967_v9 = vpop.permute.xlu0 %966  ;;  %v1074_v60 = vpack.c.bf16 %v928_v27, %v899_v17 }
 0x346   : > { %v915_v22 = vsel %vm912_vm5, %v905_v2, %v911_v6  ;;  %v918_v31 = vsel %vm912_vm5, %v911_v6, %v905_v2 }
 0x347   : > { %v931_v33 = vmul.f32 %v922_v58, %v918_v31  ;;  %v932_v61 = vmul.f32 %v926_v51, %v915_v22  ;;  %1186 = vmatprep.subr.bf16.mxu1 %v1074_v60  ;;  %v1079_v58 = vpack.c.bf16 %v960_v53, %v2115_v48  ;;  %v980_v48 = vsel %vm978_vm7, %v2320_v5, %v2337_v4 }
 0x348   : > { %1187 = vmatpush1.bf16.msra.mxu1 %v1073_v1  ;;  %v995_v27 = vmul.f32 %v988_v47, %v980_v48  ;;  %v1723_v48 = vld [vmem:[%s2542_s7 + $0xe4] ss:$8 sps:$4 sm:$0xff]  }
 0x349   : > { %v1075_v40 = vpack.c.bf16 %v931_v33, %v929_v32  ;;  %v938_v41 = vpop.permute.xlu1 %937  ;;  %v973_v43 = vpop.permute.xlu0 %972  ;;  %v1076_v49 = vpack.c.bf16 %v932_v61, %v930_v15 }
 0x34a   : > { %v982_v10 = vsel %vm978_vm7, %v973_v43, %v967_v9  ;;  %v979_v59 = vsel %vm978_vm7, %v967_v9, %v973_v43  ;;  %v1596_v43 = vld [vmem:[%s2541_s6 + $0x18] ss:$0 sm:$0xff] }
 0x34b   : > { %1188 = vmatprep.subr.bf16.mxu1 %v1076_v49  ;;  %v994_v62 = vmul.f32 %v992_v55, %v982_v10  ;;  %v993_v13 = vmul.f32 %v988_v47, %v979_v59  ;;  %v1672_v59 = vld [vmem:[%s2538_s3] ss:$8 sps:$4 sm:$0xff]  }
 0x34c   : > { %1189 = vmatpush1.bf16.msra.mxu1 %v1075_v40 }
 0x34d   : > { %v944_v36 = vpop.permute.xlu1 %943  ;;  %1190 = vmatprep.subr.bf16.mxu1 %v1078_v50  ;;  %v1000_v52 = vpop.permute.xlu0 %999  ;;  %v1084_v25 = vpack.c.bf16 %v996_v8, %v994_v62  ;;  %v1083_v63 = vpack.c.bf16 %v995_v27, %v993_v13  ;;  %v1677_v62 = vld [vmem:[%s2538_s3 + $0x10] ss:$8 sps:$4 sm:$0xff]   ;;  %v1725_v8 = vld [vmem:[%s2542_s7 + $0xe0] ss:$8 sps:$4 sm:$0xff]  }
 0x34e   : > { %v951_v54 = vsel %vm945_vm6, %v944_v36, %v938_v41  ;;  %v948_v39 = vsel %vm945_vm6, %v938_v41, %v944_v36  ;;  %v1012_v5 = vsel %vm1011_vm8, %v1000_v52, %v2356_v38  ;;  %v1015_v4 = vsel %vm1011_vm8, %v2356_v38, %v1000_v52  ;;  %v1595_v41 = vld [vmem:[%s2541_s6 + $0x10] ss:$0 sm:$0xff] }
 0x34f   : > { %v965_v44 = vmul.f32 %v959_v12, %v951_v54  ;;  %v964_v51 = vmul.f32 %v955_v28, %v948_v39  ;;  %v1026_v23 = vmul.f32 %v1021_v20, %v1012_v5  ;;  %v1027_v35 = vmul.f32 %v1025_v14, %v1015_v4 }
 0x350   : > { %1191 = vmatpush1.bf16.msra.mxu1 %v1077_v11 }
 0x351   : > { %v1035_v45 = vpop.permute.xlu1 %1034  ;;  %1192 = vmatprep.subr.bf16.mxu1 %v1080_v18  ;;  %v1002_v37 = vpop.permute.xlu0 %1001  ;;  %v1082_v26 = vpack.c.bf16 %v965_v44, %v963_v42  ;;  %v1081_v56 = vpack.c.bf16 %v964_v51, %v962_v57  ;;  %v1722_v57 = vld [vmem:[%s2542_s7 + $0xd0] ss:$8 sps:$4 sm:$0xff]  }
 0x352   : > { %1478 = vmatpush1.bf16.msra.mxu0 %v1722_v57 }
 0x353   : > { %1479 = vmatprep.subr.bf16.mxu0 %v1723_v48 }
 0x354   : > { %1193 = vmatpush1.bf16.msra.mxu1 %v1079_v58 }
 0x355   : > { %v977_v2 = vpop.permute.xlu1 %976  ;;  %1194 = vmatprep.subr.bf16.mxu1 %v1082_v26  ;;  %v1008_v0 = vpop.permute.xlu0 %1007  ;;  %v1678_v26 = vld [vmem:[%s2538_s3 + $0x24] ss:$8 sps:$4 sm:$0xff]  }
 0x356   : > { %v1013_v9 = vsel %vm1011_vm8, %v1002_v37, %v1008_v0  ;;  %v1016_v38 = vsel %vm1011_vm8, %v1008_v0, %v1002_v37  ;;  %1480 = vmatpush1.bf16.msra.mxu0 %v1725_v8  ;;  %v1728_v0 = vld [vmem:[%s2542_s7 + $0xf0] ss:$8 sps:$4 sm:$0xff]  }
 0x357   : > { %v1028_v33 = vmul.f32 %v1021_v20, %v1013_v9  ;;  %v1029_v61 = vmul.f32 %v1025_v14, %v1016_v38 }
 0x358   : > { %1195 = vmatpush1.bf16.msra.mxu1 %v1081_v56 }
 0x359   : > { %v1004_v29 = vpop.permute.xlu1 %1003  ;;  %1196 = vmatprep.subr.bf16.mxu1 %v1084_v25  ;;  %v971_v17 = vpop.permute.xlu0 %970 }
 0x35a   : > { %v981_v21 = vsel %vm978_vm7, %v971_v17, %v977_v2  ;;  %v984_v30 = vsel %vm978_vm7, %v977_v2, %v971_v17  ;;  %v1726_v2 = vld [vmem:[%s2542_s7 + $0xf4] ss:$8 sps:$4 sm:$0xff]  }
 0x35b   : > { %v997_v1 = vmul.f32 %v988_v47, %v981_v21  ;;  %v998_v6 = vmul.f32 %v992_v55, %v984_v30  ;;  %v1680_v47 = vld [vmem:[%s2538_s3 + $0x20] ss:$8 sps:$4 sm:$0xff]   ;;  %1481 = vmatprep.subr.bf16.mxu0 %v1726_v2 }
 0x35c   : > { %1197 = vmatpush1.bf16.msra.mxu1 %v1083_v63  ;;  %1482 = vmatpush1.bf16.msra.mxu0 %v1728_v0 }
 0x35d   : > { %v1085_v60 = vpack.c.bf16 %v1026_v23, %v997_v1  ;;  %v1010_v12 = vpop.permute.xlu1 %1009  ;;  %v1033_v22 = vpop.permute.xlu0 %1032  ;;  %v1086_v31 = vpack.c.bf16 %v1027_v35, %v998_v6 }
 0x35e   : > { %v1014_v32 = vsel %vm1011_vm8, %v1004_v29, %v1010_v12  ;;  %v1017_v15 = vsel %vm1011_vm8, %v1010_v12, %v1004_v29 }
 0x35f   : > { %v1030_v7 = vmul.f32 %v1021_v20, %v1014_v32  ;;  %v1031_v40 = vmul.f32 %v1025_v14, %v1017_v15  ;;  %1198 = vmatprep.subr.bf16.mxu1 %v1086_v31 }
 0x360   : > { %1199 = vmatpush1.bf16.msra.mxu1 %v1085_v60 }
 0x361   : > { %v1087_v49 = vpack.c.bf16 %v1030_v7, %v1028_v33  ;;  %v1041_v28 = vpop.permute.xlu1 %1040  ;;  %v1039_v3 = vpop.permute.xlu0 %1038  ;;  %v1088_v19 = vpack.c.bf16 %v1031_v40, %v1029_v61 }
 0x362   : > { %v1046_v50 = vsel %vm1044_vm9, %v1035_v45, %v1041_v28  ;;  %v1049_v36 = vsel %vm1044_vm9, %v1041_v28, %v1035_v45  ;;  %v1045_v52 = vsel %vm1044_vm9, %v1033_v22, %v1039_v3  ;;  %v1048_v53 = vsel %vm1044_vm9, %v1039_v3, %v1033_v22 }
 0x363   : > { %v1061_v24 = vmul.f32 %v1595_v41, %v1046_v50  ;;  %v1062_v54 = vmul.f32 %v1596_v43, %v1049_v36  ;;  %v1059_v11 = vmul.f32 %v1595_v41, %v1045_v52  ;;  %v1060_v39 = vmul.f32 %v1596_v43, %v1048_v53  ;;  %1200 = vmatprep.subr.bf16.mxu1 %v1088_v19 }
 0x364   : > { %1201 = vmatpush1.bf16.msra.mxu1 %v1087_v49 }
 0x365   : > { %v1089_v44 = vpack.c.bf16 %v1061_v24, %v1059_v11  ;;  %v1043_v18 = vpop.permute.xlu1 %1042  ;;  %v1037_v10 = vpop.permute.xlu0 %1036  ;;  %v1090_v55 = vpack.c.bf16 %v1062_v54, %v1060_v39 }
 0x366   : > { %v1047_v34 = vsel %vm1044_vm9, %v1037_v10, %v1043_v18  ;;  %v1050_v42 = vsel %vm1044_vm9, %v1043_v18, %v1037_v10 }
 0x367   : > { %v1063_v45 = vmul.f32 %v1595_v41, %v1047_v34  ;;  %v1064_v37 = vmul.f32 %v1596_v43, %v1050_v42  ;;  %1202 = vmatprep.subr.bf16.mxu1 %v1090_v55 }
 0x368   : > { %1203 = vmatpush1.bf16.msra.mxu1 %v1089_v44 }
 0x369   : > { %v1091_v58 = vpack.c.bf16 %v1063_v45, %v1063_v45  ;;  %v1092_v46 = vpack.c.bf16 %v1064_v37, %v1064_v37 }
 0x36b   : > { %1603 = vmatprep.subr.msk.bf16.mxu1 %vm570_vm0, %v1092_v46  ;;  %v1173_v51 = vsel %vm570_vm0, %v1091_v58, 0 }
 0x36c   : > { %1205 = vmatpush1.bf16.msra.mxu1 %v1173_v51 }
 0x36f   : > { %1211 = vmatmul.mubr.bf16.vlgmr.msra.gmra.mrb[8].mxu1 %v1672_v59 }
 0x370   : > { %1605 = vmatprep.mubr.msk.bf16.mxu1 %vm1162_vm1, %v1675_v16 }
 0x376   : > { %v1108_v13 = vpop.permute.xlu0 %1107  ;;  %v1113_v25 = vpop.permute.xlu1 %1112 }
 0x377   : > { %1221 = vmatmul.mubr.bf16.gmra.mrb[12].mxu1 %v1677_v62 }
 0x378   : > { %1606 = vmatprep.mubr.msk.bf16.mxu1 %vm1162_vm1, %v1678_v26 }
 0x37a   : > { %v1118_v1 = vpop.permute.xlu0 %1117  ;;  %v1123_v12 = vpop.permute.xlu1 %1122 }
 0x37e   : > { %v1128_v49 = vpop.permute.xlu0 %1127  ;;  %v1133_v36 = vpop.permute.xlu1 %1132 }
 0x37f   : > { %1231 = vmatmul.mubr.bf16.gmra.mrb[16].mxu1 %v1680_v47 }
 0x442   : > { %v1212_v56 = vpop.f32.mrb[8].mxu1 }
 0x443   : > { %v1213_v20 = vadd.f32 %v1212_v56, %v1108_v13  ;;  %v1214_v14 = vpop.f32.mrb[9].mxu1 }
 0x444   : > { %v1215_v27 = vadd.f32 %v1214_v14, %v1108_v13  ;;  %v1216_v5 = vpop.f32.mrb[10].mxu1 }
 0x445   : > { %v1217_v4 = vadd.f32 %v1216_v5, %v1113_v25  ;;  %v1218_v29 = vpop.f32.mrb[11].mxu1  ;;  %v1241_v63 = vmax.f32 %v1213_v20, 0.0 }
 0x446   : > { %v1219_v17 = vadd.f32 %v1218_v29, %v1113_v25  ;;  %v1242_v30 = vmax.f32 %v1215_v27, 0.0 }
 0x447   : > { %v1243_v21 = vmax.f32 %v1217_v4, 0.0 }
 0x448   : > { %v1244_v23 = vmax.f32 %v1219_v17, 0.0 }
 0x449   : > { %v1253_v35 = vpack.c.bf16 %v1243_v21, %v1241_v63 }
 0x44a   : > { %v1222_v6 = vpop.f32.mrb[12].mxu1  ;;  %v1254_v9 = vpack.c.bf16 %v1244_v23, %v1242_v30 }
 0x44b   : > { %v1223_v38 = vadd.f32 %v1222_v6, %v1118_v1  ;;  %v1224_v60 = vpop.f32.mrb[13].mxu1 }
 0x44c   : > { %v1225_v22 = vadd.f32 %v1224_v60, %v1118_v1  ;;  %v1226_v31 = vpop.f32.mrb[14].mxu1  ;;  %1483 = vmatprep.mubr.bf16.mxu0 %v1254_v9 }
 0x44d   : > { %v1227_v32 = vadd.f32 %v1226_v31, %v1123_v12  ;;  %v1228_v15 = vpop.f32.mrb[15].mxu1  ;;  %1484 = vmatmul.mubr.bf16.vlgmr.msra.gmra.mrb[0].mxu0 %v1253_v35  ;;  %v1245_v61 = vmax.f32 %v1223_v38, 0.0 }
 0x44e   : > { %v1229_v33 = vadd.f32 %v1228_v15, %v1123_v12  ;;  %v1246_v40 = vmax.f32 %v1225_v22, 0.0 }
 0x44f   : > { %v1247_v7 = vmax.f32 %v1227_v32, 0.0 }
 0x450   : > { %v1248_v41 = vmax.f32 %v1229_v33, 0.0 }
 0x451   : > { %v1255_v43 = vpack.c.bf16 %v1247_v7, %v1245_v61 }
 0x452   : > { %v1256_v28 = vpack.c.bf16 %v1248_v41, %v1246_v40  ;;  %v1232_v3 = vpop.f32.mrb[16].mxu1 }
 0x453   : > { %v1233_v19 = vadd.f32 %v1232_v3, %v1128_v49  ;;  %v1234_v50 = vpop.f32.mrb[17].mxu1 }
 0x454   : > { %v1235_v52 = vadd.f32 %v1234_v50, %v1128_v49  ;;  %v1236_v53 = vpop.f32.mrb[18].mxu1  ;;  %1493 = vmatprep.mubr.bf16.mxu0 %v1256_v28 }
 0x455   : > { %v1237_v24 = vadd.f32 %v1236_v53, %v1133_v36  ;;  %v1238_v54 = vpop.f32.mrb[19].mxu1  ;;  %1494 = vmatmul.mubr.bf16.gmra.mrb[4].mxu0 %v1255_v43  ;;  %v1249_v39 = vmax.f32 %v1233_v19, 0.0 }
 0x456   : > { %v1239_v11 = vadd.f32 %v1238_v54, %v1133_v36  ;;  %v1250_v18 = vmax.f32 %v1235_v52, 0.0 }
 0x457   : > { %v1251_v44 = vmax.f32 %v1237_v24, 0.0 }
 0x458   : > { %v1252_v10 = vmax.f32 %v1239_v11, 0.0 }
 0x459   : > { %v1257_v55 = vpack.c.bf16 %v1251_v44, %v1249_v39 }
 0x45a   : > { %v1258_v34 = vpack.c.bf16 %v1252_v10, %v1250_v18 }
 0x45c   : > { %1503 = vmatprep.mubr.bf16.mxu0 %v1258_v34 }
 0x45d   : > { %1504 = vmatmul.mubr.bf16.gmra.mrb[8].mxu0 %v1257_v55 }
 0x520   : > { %v1485_v42 = vpop.f32.mrb[0].mxu0 }
 0x521   : > { %1514 = vst [vmem:[%s305_s24] sm:$0xff] %v1485_v42  ;;  %v1487_v45 = vpop.f32.mrb[1].mxu0 }
 0x522   : > { %1515 = vst [vmem:[%s305_s24 + $0x8] sm:$0xff] %v1487_v45  ;;  %v1489_v37 = vpop.f32.mrb[2].mxu0 }
 0x523   : > { %1516 = vst [vmem:[%s305_s24 + $0x10] sm:$0xff] %v1489_v37  ;;  %v1491_v58 = vpop.f32.mrb[3].mxu0 }
 0x524   : > { %1517 = vst [vmem:[%s305_s24 + $0x18] sm:$0xff] %v1491_v58 }
 0x528   : > { %v1495_v46 = vpop.f32.mrb[4].mxu0 }
 0x529   : > { %1518 = vst [vmem:[%s305_s24 + $0x20] sm:$0xff] %v1495_v46  ;;  %v1497_v51 = vpop.f32.mrb[5].mxu0 }
 0x52a   : > { %1519 = vst [vmem:[%s305_s24 + $0x28] sm:$0xff] %v1497_v51  ;;  %v1499_v59 = vpop.f32.mrb[6].mxu0 }
 0x52b   : > { %1520 = vst [vmem:[%s305_s24 + $0x30] sm:$0xff] %v1499_v59  ;;  %v1501_v16 = vpop.f32.mrb[7].mxu0 }
 0x52c   : > { %1521 = vst [vmem:[%s305_s24 + $0x38] sm:$0xff] %v1501_v16 }
 0x530   : > { %v1505_v62 = vpop.f32.mrb[8].mxu0 }
 0x531   : > { %1522 = vst [vmem:[%s305_s24 + $0x40] sm:$0xff] %v1505_v62  ;;  %v1507_v26 = vpop.f32.mrb[9].mxu0 }
 0x532   : > { %1523 = vst [vmem:[%s305_s24 + $0x48] sm:$0xff] %v1507_v26  ;;  %v1509_v47 = vpop.f32.mrb[10].mxu0 }
 0x533   : > { %1524 = vst [vmem:[%s305_s24 + $0x50] sm:$0xff] %v1509_v47  ;;  %v1511_v57 = vpop.f32.mrb[11].mxu0 }
 0x534   : > { %1525 = vst [vmem:[%s305_s24 + $0x58] sm:$0xff] %v1511_v57 }
 0x535 PF: > { %s18_s27 = sadd.s32 1, %s1735_s27  }
 0x536   : > { %p15_p4 = scmp.ge.s32.totalorder %s18_s27, 4  }
 0x538   :  { %17 = sbr.rel (!%p15_p4) target bundleno = 1 (0x1), region = 82 }

</bundles_post_ra>
